<compile_context>
chip_gen: v5e
topology: v5e:2x2
jax: 0.10.0
libtpu: 0.0.40
codegen_flags: <defaults>
</compile_context>

<pallas_src>
import functools

import jax
import jax.numpy as jnp
import numpy as np
from jax.experimental import pallas as pl
from jax.experimental.pallas import tpu as pltpu


def translation_kernel(enc_flat_ref, dec_flat_ref,
                       w_ih_e_ref, w_hh_e_ref, b_e_ref,
                       w_hid_ref, b_hid_ref,
                       w_ih_d_ref, w_hh_d_ref, b_d_ref,
                       w_out_ref, b_out_ref,
                       out_ref, *, T_enc, T_dec, B):
    f32 = jnp.float32
    H = w_hh_e_ref.shape[0]     # encoder hidden size (4H = 128 lanes)
    TS = w_hh_d_ref.shape[0]    # translation space / decoder hidden size

    # ---- encoder: single fused, loop-invariant input projection (+bias) ----
    xpe = (jnp.dot(enc_flat_ref[...], w_ih_e_ref[...], preferred_element_type=f32)
           + b_e_ref[...])                                   # (T_enc*B, 4H) lane-dense
    w_hh_e = w_hh_e_ref[...]                                 # (H, 4H)

    # ---- encoder LSTM recurrence: ONE h @ W_hh matmul per step ----
    h = jnp.zeros((B, H), f32)
    c = jnp.zeros((B, H), f32)
    for t in range(T_enc):
        r = t * B  # sublane-aligned static slice (B is a multiple of 8)
        pre = xpe[r:r + B] + jnp.dot(h, w_hh_e, preferred_element_type=f32)  # (B, 4H)
        sig = jax.nn.sigmoid(pre)                            # one EUP pass over the vreg
        i_g = sig[:, 0:H]
        f_g = sig[:, H:2 * H]
        o_g = sig[:, 3 * H:4 * H]
        g_g = jnp.tanh(pre[:, 2 * H:3 * H])
        c = f_g * c + i_g * g_g
        h = o_g * jnp.tanh(c)

    # ---- self.hidden(encoded_states[0]); states = (state, state) ----
    state = jnp.dot(h, w_hid_ref[...], preferred_element_type=f32) + b_hid_ref[...]

    # ---- decoder: fused input projection over all teacher-forced steps ----
    xpd = (jnp.dot(dec_flat_ref[...], w_ih_d_ref[...], preferred_element_type=f32)
           + b_d_ref[...])                                   # (T_dec*B, 4*TS)
    w_hh_d = w_hh_d_ref[...]                                 # (TS, 4*TS)

    hd = state
    cd = state
    hd_steps = []                                            # keep hiddens in registers
    for t in range(T_dec):
        r = t * B
        pre = xpd[r:r + B] + jnp.dot(hd, w_hh_d, preferred_element_type=f32)
        sig = jax.nn.sigmoid(pre)
        i_g = sig[:, 0:TS]
        f_g = sig[:, TS:2 * TS]
        o_g = sig[:, 3 * TS:4 * TS]
        g_g = jnp.tanh(pre[:, 2 * TS:3 * TS])
        cd = f_g * cd + i_g * g_g
        hd = o_g * jnp.tanh(cd)
        hd_steps.append(hd)

    # ---- single fused output projection + one lane-dense unmasked store ----
    hd_all = jnp.concatenate(hd_steps, axis=0)               # (T_dec*B, TS)
    out_ref[...] = (jnp.dot(hd_all, w_out_ref[...], preferred_element_type=f32)
                    + b_out_ref[...])


def pallas_forward(params, emerged, description):
    B, T_enc = emerged.shape
    T_dec = description.shape[1] - 1
    E_enc = params["emb_enc"].shape[1]
    E_dec = params["emb_dec"].shape[1]
    TS = params["w_hh_d"].shape[0]
    V_out = params["w_out"].shape[1]

    B_pad = max(8, -(-B // 8) * 8)            # batch -> multiple of 8 sublanes
    V_pad = max(128, -(-V_out // 128) * 128)  # logits -> lane-dense (multiple of 128)

    # Glue: embedding gathers, time-major transpose, batch padding, flatten (t-major rows).
    enc_emb = jnp.take(params["emb_enc"], emerged, axis=0)            # (B, T_enc, E_enc)
    enc_emb = jnp.transpose(enc_emb, (1, 0, 2)).astype(jnp.float32)   # (T_enc, B, E_enc)
    enc_emb = jnp.pad(enc_emb, ((0, 0), (0, B_pad - B), (0, 0)))
    enc_flat = enc_emb.reshape(T_enc * B_pad, E_enc)

    dec_emb = jnp.take(params["emb_dec"], description[:, :-1], axis=0)  # target[:-1]
    dec_emb = jnp.transpose(dec_emb, (1, 0, 2)).astype(jnp.float32)     # (T_dec, B, E_dec)
    dec_emb = jnp.pad(dec_emb, ((0, 0), (0, B_pad - B), (0, 0)))
    dec_flat = dec_emb.reshape(T_dec * B_pad, E_dec)

    # Output projection padded to a full lane width (128) for an unmasked store.
    w_out_pad = jnp.pad(params["w_out"], ((0, 0), (0, V_pad - V_out)))
    b_out_pad = jnp.pad(params["b_out"], ((0, 0), (0, V_pad - V_out)))

    kernel = functools.partial(translation_kernel, T_enc=T_enc, T_dec=T_dec, B=B_pad)
    vmem = pl.BlockSpec(memory_space=pltpu.MemorySpace.VMEM)

    out = pl.pallas_call(
        kernel,
        out_shape=jax.ShapeDtypeStruct((T_dec * B_pad, V_pad), jnp.float32),
        in_specs=[vmem] * 12,
        out_specs=vmem,
    )(enc_flat, dec_flat,
      params["w_ih_e"], params["w_hh_e"], params["b_e"],
      params["w_hid"], params["b_hid"],
      params["w_ih_d"], params["w_hh_d"], params["b_d"],
      w_out_pad, b_out_pad)

    # slice away batch / vocab padding, then torch.stack(...).permute(1, 2, 0) -> (B, V_out, T_dec)
    out = out.reshape(T_dec, B_pad, V_pad)[:, :B, :V_out]
    return jnp.transpose(out, (1, 2, 0))


def reference_forward(params, emerged, description):
    # Pure-JAX reference with identical math (for correctness check).
    def lstm(x, h, c, w_ih, w_hh, b, H):
        g = (jnp.dot(x, w_ih, precision=jax.lax.Precision.HIGHEST)
             + jnp.dot(h, w_hh, precision=jax.lax.Precision.HIGHEST) + b)
        i = jax.nn.sigmoid(g[:, :H])
        f = jax.nn.sigmoid(g[:, H:2 * H])
        gg = jnp.tanh(g[:, 2 * H:3 * H])
        o = jax.nn.sigmoid(g[:, 3 * H:4 * H])
        c2 = f * c + i * gg
        return o * jnp.tanh(c2), c2

    B = emerged.shape[0]
    H_enc = params["w_hh_e"].shape[0]
    TS = params["w_hh_d"].shape[0]
    h = jnp.zeros((B, H_enc), jnp.float32)
    c = jnp.zeros((B, H_enc), jnp.float32)
    enc_emb = jnp.take(params["emb_enc"], emerged, axis=0)
    for t in range(emerged.shape[1]):
        h, c = lstm(enc_emb[:, t], h, c, params["w_ih_e"], params["w_hh_e"],
                    params["b_e"], H_enc)
    state = jnp.dot(h, params["w_hid"],
                    precision=jax.lax.Precision.HIGHEST) + params["b_hid"]
    hd, cd = state, state
    dec_emb = jnp.take(params["emb_dec"], description[:, :-1], axis=0)
    outs = []
    for t in range(description.shape[1] - 1):
        hd, cd = lstm(dec_emb[:, t], hd, cd, params["w_ih_d"], params["w_hh_d"],
                      params["b_d"], TS)
        outs.append(jnp.dot(hd, params["w_out"],
                            precision=jax.lax.Precision.HIGHEST) + params["b_out"])
    return jnp.transpose(jnp.stack(outs), (1, 2, 0))


def init_params(key, *, v_enc, e_enc, h_enc, ts, v_out, e_dec):
    ks = jax.random.split(key, 12)
    s = 0.1
    return {
        "emb_enc": s * jax.random.normal(ks[0], (v_enc, e_enc), jnp.float32),
        "w_ih_e":  s * jax.random.normal(ks[1], (e_enc, 4 * h_enc), jnp.float32),
        "w_hh_e":  s * jax.random.normal(ks[2], (h_enc, 4 * h_enc), jnp.float32),
        "b_e":     s * jax.random.normal(ks[3], (1, 4 * h_enc), jnp.float32),
        "w_hid":   s * jax.random.normal(ks[4], (h_enc, ts), jnp.float32),
        "b_hid":   s * jax.random.normal(ks[5], (1, ts), jnp.float32),
        "emb_dec": s * jax.random.normal(ks[6], (v_out, e_dec), jnp.float32),
        "w_ih_d":  s * jax.random.normal(ks[7], (e_dec, 4 * ts), jnp.float32),
        "w_hh_d":  s * jax.random.normal(ks[8], (ts, 4 * ts), jnp.float32),
        "b_d":     s * jax.random.normal(ks[9], (1, 4 * ts), jnp.float32),
        "w_out":   s * jax.random.normal(ks[10], (ts, v_out), jnp.float32),
        "b_out":   s * jax.random.normal(ks[11], (1, v_out), jnp.float32),
    }


if __name__ == "__main__":
    B = 4          # batch
    T_ENC = 6      # emergent-message length
    S_DESC = 8     # description length (decoder runs S_DESC - 1 steps)
    V_ENC = 20     # emergent vocab
    E_ENC = 16     # encoder embedding dim
    H_ENC = 32     # encoder LSTM hidden size (4H = 128 lanes)
    TS = 32        # translation_space (LazyLinear out / decoder hidden)
    V_OUT = 24     # description vocab (decoder output classes)
    E_DEC = 16     # decoder embedding dim

    root = jax.random.PRNGKey(0)
    k_par, k_msg, k_desc = jax.random.split(root, 3)
    params = init_params(k_par, v_enc=V_ENC, e_enc=E_ENC, h_enc=H_ENC,
                         ts=TS, v_out=V_OUT, e_dec=E_DEC)

    emerged = jax.random.randint(k_msg, (B, T_ENC), 0, V_ENC, dtype=jnp.int32)
    description = jax.random.randint(k_desc, (B, S_DESC), 0, V_OUT, dtype=jnp.int32)

    out = pallas_forward(params, emerged, description)
    out = jax.block_until_ready(out)

    assert out.shape == (B, V_OUT, S_DESC - 1), out.shape

    ref = jax.block_until_ready(reference_forward(params, emerged, description))
    np.testing.assert_allclose(np.asarray(out), np.asarray(ref),
                               rtol=1e-3, atol=1e-3)

    print("KERNEL_OK")
</pallas_src>

<mosaic_0001>
module attributes {stable_mosaic.version = 11 : i64} {
  func.func @translation_kernel(%arg0: memref<48x16xf32, #tpu.memory_space<vmem>>, %arg1: memref<56x16xf32, #tpu.memory_space<vmem>>, %arg2: memref<16x128xf32, #tpu.memory_space<vmem>>, %arg3: memref<32x128xf32, #tpu.memory_space<vmem>>, %arg4: memref<1x128xf32, #tpu.memory_space<vmem>>, %arg5: memref<32x32xf32, #tpu.memory_space<vmem>>, %arg6: memref<1x32xf32, #tpu.memory_space<vmem>>, %arg7: memref<16x128xf32, #tpu.memory_space<vmem>>, %arg8: memref<32x128xf32, #tpu.memory_space<vmem>>, %arg9: memref<1x128xf32, #tpu.memory_space<vmem>>, %arg10: memref<32x128xf32, #tpu.memory_space<vmem>>, %arg11: memref<1x128xf32, #tpu.memory_space<vmem>>, %arg12: memref<56x128xf32, #tpu.memory_space<vmem>>) attributes {dimension_semantics = [], scalar_prefetch = 0 : i64, scratch_operands = 0 : i64, tpu.core_type = #tpu.core_type<tc>} {
    %c0 = arith.constant 0 : index
    %c0_0 = arith.constant 0 : index
    %0 = vector.load %arg0[%c0, %c0_0] : memref<48x16xf32, #tpu.memory_space<vmem>>, vector<48x16xf32>
    %c0_1 = arith.constant 0 : index
    %c0_2 = arith.constant 0 : index
    %1 = vector.load %arg2[%c0_1, %c0_2] : memref<16x128xf32, #tpu.memory_space<vmem>>, vector<16x128xf32>
    %cst = arith.constant dense<0.000000e+00> : vector<48x128xf32>
    %2 = tpu.matmul %0, %1, %cst {dimension_numbers = #tpu.dot_dimension_numbers<[1], [0], [0], [1], [0, 0, 1, 1], [], []>} : vector<48x16xf32>, vector<16x128xf32>, vector<48x128xf32> -> vector<48x128xf32>
    %c0_3 = arith.constant 0 : index
    %c0_4 = arith.constant 0 : index
    %3 = vector.load %arg4[%c0_3, %c0_4] : memref<1x128xf32, #tpu.memory_space<vmem>>, vector<1x128xf32>
    %4 = vector.broadcast %3 : vector<1x128xf32> to vector<48x128xf32>
    %5 = arith.addf %2, %4 : vector<48x128xf32>
    %c0_5 = arith.constant 0 : index
    %c0_6 = arith.constant 0 : index
    %6 = vector.load %arg3[%c0_5, %c0_6] : memref<32x128xf32, #tpu.memory_space<vmem>>, vector<32x128xf32>
    %cst_7 = arith.constant 0.000000e+00 : f32
    %7 = vector.broadcast %cst_7 : f32 to vector<8x32xf32>
    %cst_8 = arith.constant 0.000000e+00 : f32
    %8 = vector.broadcast %cst_8 : f32 to vector<8x32xf32>
    %9 = vector.extract_strided_slice %5 {offsets = [0, 0], sizes = [8, 128], strides = [1, 1]} : vector<48x128xf32> to vector<8x128xf32>
    %cst_9 = arith.constant dense<0.000000e+00> : vector<8x128xf32>
    %10 = tpu.matmul %7, %6, %cst_9 {dimension_numbers = #tpu.dot_dimension_numbers<[1], [0], [0], [1], [0, 0, 1, 1], [], []>} : vector<8x32xf32>, vector<32x128xf32>, vector<8x128xf32> -> vector<8x128xf32>
    %11 = arith.addf %9, %10 : vector<8x128xf32>
    %12 = arith.negf %11 : vector<8x128xf32>
    %13 = math.exp %12 : vector<8x128xf32>
    %cst_10 = arith.constant 1.000000e+00 : f32
    %14 = vector.broadcast %cst_10 : f32 to vector<8x128xf32>
    %15 = arith.addf %14, %13 : vector<8x128xf32>
    %16 = arith.divf %14, %15 : vector<8x128xf32>
    %17 = vector.extract_strided_slice %16 {offsets = [0, 0], sizes = [8, 32], strides = [1, 1]} : vector<8x128xf32> to vector<8x32xf32>
    %18 = vector.extract_strided_slice %16 {offsets = [0, 32], sizes = [8, 32], strides = [1, 1]} : vector<8x128xf32> to vector<8x32xf32>
    %19 = vector.extract_strided_slice %16 {offsets = [0, 96], sizes = [8, 32], strides = [1, 1]} : vector<8x128xf32> to vector<8x32xf32>
    %20 = vector.extract_strided_slice %11 {offsets = [0, 64], sizes = [8, 32], strides = [1, 1]} : vector<8x128xf32> to vector<8x32xf32>
    %21 = math.tanh %20 : vector<8x32xf32>
    %22 = arith.mulf %18, %8 : vector<8x32xf32>
    %23 = arith.mulf %17, %21 : vector<8x32xf32>
    %24 = arith.addf %22, %23 : vector<8x32xf32>
    %25 = math.tanh %24 : vector<8x32xf32>
    %26 = arith.mulf %19, %25 : vector<8x32xf32>
    %27 = vector.extract_strided_slice %5 {offsets = [8, 0], sizes = [8, 128], strides = [1, 1]} : vector<48x128xf32> to vector<8x128xf32>
    %cst_11 = arith.constant dense<0.000000e+00> : vector<8x128xf32>
    %28 = tpu.matmul %26, %6, %cst_11 {dimension_numbers = #tpu.dot_dimension_numbers<[1], [0], [0], [1], [0, 0, 1, 1], [], []>} : vector<8x32xf32>, vector<32x128xf32>, vector<8x128xf32> -> vector<8x128xf32>
    %29 = arith.addf %27, %28 : vector<8x128xf32>
    %30 = arith.negf %29 : vector<8x128xf32>
    %31 = math.exp %30 : vector<8x128xf32>
    %cst_12 = arith.constant 1.000000e+00 : f32
    %32 = vector.broadcast %cst_12 : f32 to vector<8x128xf32>
    %33 = arith.addf %32, %31 : vector<8x128xf32>
    %34 = arith.divf %32, %33 : vector<8x128xf32>
    %35 = vector.extract_strided_slice %34 {offsets = [0, 0], sizes = [8, 32], strides = [1, 1]} : vector<8x128xf32> to vector<8x32xf32>
    %36 = vector.extract_strided_slice %34 {offsets = [0, 32], sizes = [8, 32], strides = [1, 1]} : vector<8x128xf32> to vector<8x32xf32>
    %37 = vector.extract_strided_slice %34 {offsets = [0, 96], sizes = [8, 32], strides = [1, 1]} : vector<8x128xf32> to vector<8x32xf32>
    %38 = vector.extract_strided_slice %29 {offsets = [0, 64], sizes = [8, 32], strides = [1, 1]} : vector<8x128xf32> to vector<8x32xf32>
    %39 = math.tanh %38 : vector<8x32xf32>
    %40 = arith.mulf %36, %24 : vector<8x32xf32>
    %41 = arith.mulf %35, %39 : vector<8x32xf32>
    %42 = arith.addf %40, %41 : vector<8x32xf32>
    %43 = math.tanh %42 : vector<8x32xf32>
    %44 = arith.mulf %37, %43 : vector<8x32xf32>
    %45 = vector.extract_strided_slice %5 {offsets = [16, 0], sizes = [8, 128], strides = [1, 1]} : vector<48x128xf32> to vector<8x128xf32>
    %cst_13 = arith.constant dense<0.000000e+00> : vector<8x128xf32>
    %46 = tpu.matmul %44, %6, %cst_13 {dimension_numbers = #tpu.dot_dimension_numbers<[1], [0], [0], [1], [0, 0, 1, 1], [], []>} : vector<8x32xf32>, vector<32x128xf32>, vector<8x128xf32> -> vector<8x128xf32>
    %47 = arith.addf %45, %46 : vector<8x128xf32>
    %48 = arith.negf %47 : vector<8x128xf32>
    %49 = math.exp %48 : vector<8x128xf32>
    %cst_14 = arith.constant 1.000000e+00 : f32
    %50 = vector.broadcast %cst_14 : f32 to vector<8x128xf32>
    %51 = arith.addf %50, %49 : vector<8x128xf32>
    %52 = arith.divf %50, %51 : vector<8x128xf32>
    %53 = vector.extract_strided_slice %52 {offsets = [0, 0], sizes = [8, 32], strides = [1, 1]} : vector<8x128xf32> to vector<8x32xf32>
    %54 = vector.extract_strided_slice %52 {offsets = [0, 32], sizes = [8, 32], strides = [1, 1]} : vector<8x128xf32> to vector<8x32xf32>
    %55 = vector.extract_strided_slice %52 {offsets = [0, 96], sizes = [8, 32], strides = [1, 1]} : vector<8x128xf32> to vector<8x32xf32>
    %56 = vector.extract_strided_slice %47 {offsets = [0, 64], sizes = [8, 32], strides = [1, 1]} : vector<8x128xf32> to vector<8x32xf32>
    %57 = math.tanh %56 : vector<8x32xf32>
    %58 = arith.mulf %54, %42 : vector<8x32xf32>
    %59 = arith.mulf %53, %57 : vector<8x32xf32>
    %60 = arith.addf %58, %59 : vector<8x32xf32>
    %61 = math.tanh %60 : vector<8x32xf32>
    %62 = arith.mulf %55, %61 : vector<8x32xf32>
    %63 = vector.extract_strided_slice %5 {offsets = [24, 0], sizes = [8, 128], strides = [1, 1]} : vector<48x128xf32> to vector<8x128xf32>
    %cst_15 = arith.constant dense<0.000000e+00> : vector<8x128xf32>
    %64 = tpu.matmul %62, %6, %cst_15 {dimension_numbers = #tpu.dot_dimension_numbers<[1], [0], [0], [1], [0, 0, 1, 1], [], []>} : vector<8x32xf32>, vector<32x128xf32>, vector<8x128xf32> -> vector<8x128xf32>
    %65 = arith.addf %63, %64 : vector<8x128xf32>
    %66 = arith.negf %65 : vector<8x128xf32>
    %67 = math.exp %66 : vector<8x128xf32>
    %cst_16 = arith.constant 1.000000e+00 : f32
    %68 = vector.broadcast %cst_16 : f32 to vector<8x128xf32>
    %69 = arith.addf %68, %67 : vector<8x128xf32>
    %70 = arith.divf %68, %69 : vector<8x128xf32>
    %71 = vector.extract_strided_slice %70 {offsets = [0, 0], sizes = [8, 32], strides = [1, 1]} : vector<8x128xf32> to vector<8x32xf32>
    %72 = vector.extract_strided_slice %70 {offsets = [0, 32], sizes = [8, 32], strides = [1, 1]} : vector<8x128xf32> to vector<8x32xf32>
    %73 = vector.extract_strided_slice %70 {offsets = [0, 96], sizes = [8, 32], strides = [1, 1]} : vector<8x128xf32> to vector<8x32xf32>
    %74 = vector.extract_strided_slice %65 {offsets = [0, 64], sizes = [8, 32], strides = [1, 1]} : vector<8x128xf32> to vector<8x32xf32>
    %75 = math.tanh %74 : vector<8x32xf32>
    %76 = arith.mulf %72, %60 : vector<8x32xf32>
    %77 = arith.mulf %71, %75 : vector<8x32xf32>
    %78 = arith.addf %76, %77 : vector<8x32xf32>
    %79 = math.tanh %78 : vector<8x32xf32>
    %80 = arith.mulf %73, %79 : vector<8x32xf32>
    %81 = vector.extract_strided_slice %5 {offsets = [32, 0], sizes = [8, 128], strides = [1, 1]} : vector<48x128xf32> to vector<8x128xf32>
    %cst_17 = arith.constant dense<0.000000e+00> : vector<8x128xf32>
    %82 = tpu.matmul %80, %6, %cst_17 {dimension_numbers = #tpu.dot_dimension_numbers<[1], [0], [0], [1], [0, 0, 1, 1], [], []>} : vector<8x32xf32>, vector<32x128xf32>, vector<8x128xf32> -> vector<8x128xf32>
    %83 = arith.addf %81, %82 : vector<8x128xf32>
    %84 = arith.negf %83 : vector<8x128xf32>
    %85 = math.exp %84 : vector<8x128xf32>
    %cst_18 = arith.constant 1.000000e+00 : f32
    %86 = vector.broadcast %cst_18 : f32 to vector<8x128xf32>
    %87 = arith.addf %86, %85 : vector<8x128xf32>
    %88 = arith.divf %86, %87 : vector<8x128xf32>
    %89 = vector.extract_strided_slice %88 {offsets = [0, 0], sizes = [8, 32], strides = [1, 1]} : vector<8x128xf32> to vector<8x32xf32>
    %90 = vector.extract_strided_slice %88 {offsets = [0, 32], sizes = [8, 32], strides = [1, 1]} : vector<8x128xf32> to vector<8x32xf32>
    %91 = vector.extract_strided_slice %88 {offsets = [0, 96], sizes = [8, 32], strides = [1, 1]} : vector<8x128xf32> to vector<8x32xf32>
    %92 = vector.extract_strided_slice %83 {offsets = [0, 64], sizes = [8, 32], strides = [1, 1]} : vector<8x128xf32> to vector<8x32xf32>
    %93 = math.tanh %92 : vector<8x32xf32>
    %94 = arith.mulf %90, %78 : vector<8x32xf32>
    %95 = arith.mulf %89, %93 : vector<8x32xf32>
    %96 = arith.addf %94, %95 : vector<8x32xf32>
    %97 = math.tanh %96 : vector<8x32xf32>
    %98 = arith.mulf %91, %97 : vector<8x32xf32>
    %99 = vector.extract_strided_slice %5 {offsets = [40, 0], sizes = [8, 128], strides = [1, 1]} : vector<48x128xf32> to vector<8x128xf32>
    %cst_19 = arith.constant dense<0.000000e+00> : vector<8x128xf32>
    %100 = tpu.matmul %98, %6, %cst_19 {dimension_numbers = #tpu.dot_dimension_numbers<[1], [0], [0], [1], [0, 0, 1, 1], [], []>} : vector<8x32xf32>, vector<32x128xf32>, vector<8x128xf32> -> vector<8x128xf32>
    %101 = arith.addf %99, %100 : vector<8x128xf32>
    %102 = arith.negf %101 : vector<8x128xf32>
    %103 = math.exp %102 : vector<8x128xf32>
    %cst_20 = arith.constant 1.000000e+00 : f32
    %104 = vector.broadcast %cst_20 : f32 to vector<8x128xf32>
    %105 = arith.addf %104, %103 : vector<8x128xf32>
    %106 = arith.divf %104, %105 : vector<8x128xf32>
    %107 = vector.extract_strided_slice %106 {offsets = [0, 0], sizes = [8, 32], strides = [1, 1]} : vector<8x128xf32> to vector<8x32xf32>
    %108 = vector.extract_strided_slice %106 {offsets = [0, 32], sizes = [8, 32], strides = [1, 1]} : vector<8x128xf32> to vector<8x32xf32>
    %109 = vector.extract_strided_slice %106 {offsets = [0, 96], sizes = [8, 32], strides = [1, 1]} : vector<8x128xf32> to vector<8x32xf32>
    %110 = vector.extract_strided_slice %101 {offsets = [0, 64], sizes = [8, 32], strides = [1, 1]} : vector<8x128xf32> to vector<8x32xf32>
    %111 = math.tanh %110 : vector<8x32xf32>
    %112 = arith.mulf %108, %96 : vector<8x32xf32>
    %113 = arith.mulf %107, %111 : vector<8x32xf32>
    %114 = arith.addf %112, %113 : vector<8x32xf32>
    %115 = math.tanh %114 : vector<8x32xf32>
    %116 = arith.mulf %109, %115 : vector<8x32xf32>
    %c0_21 = arith.constant 0 : index
    %c0_22 = arith.constant 0 : index
    %117 = vector.load %arg5[%c0_21, %c0_22] : memref<32x32xf32, #tpu.memory_space<vmem>>, vector<32x32xf32>
    %cst_23 = arith.constant dense<0.000000e+00> : vector<8x32xf32>
    %118 = tpu.matmul %116, %117, %cst_23 {dimension_numbers = #tpu.dot_dimension_numbers<[1], [0], [0], [1], [0, 0, 1, 1], [], []>} : vector<8x32xf32>, vector<32x32xf32>, vector<8x32xf32> -> vector<8x32xf32>
    %c0_24 = arith.constant 0 : index
    %c0_25 = arith.constant 0 : index
    %119 = vector.load %arg6[%c0_24, %c0_25] : memref<1x32xf32, #tpu.memory_space<vmem>>, vector<1x32xf32>
    %120 = vector.broadcast %119 : vector<1x32xf32> to vector<8x32xf32>
    %121 = arith.addf %118, %120 : vector<8x32xf32>
    %c0_26 = arith.constant 0 : index
    %c0_27 = arith.constant 0 : index
    %122 = vector.load %arg1[%c0_26, %c0_27] : memref<56x16xf32, #tpu.memory_space<vmem>>, vector<56x16xf32>
    %c0_28 = arith.constant 0 : index
    %c0_29 = arith.constant 0 : index
    %123 = vector.load %arg7[%c0_28, %c0_29] : memref<16x128xf32, #tpu.memory_space<vmem>>, vector<16x128xf32>
    %cst_30 = arith.constant dense<0.000000e+00> : vector<56x128xf32>
    %124 = tpu.matmul %122, %123, %cst_30 {dimension_numbers = #tpu.dot_dimension_numbers<[1], [0], [0], [1], [0, 0, 1, 1], [], []>} : vector<56x16xf32>, vector<16x128xf32>, vector<56x128xf32> -> vector<56x128xf32>
    %c0_31 = arith.constant 0 : index
    %c0_32 = arith.constant 0 : index
    %125 = vector.load %arg9[%c0_31, %c0_32] : memref<1x128xf32, #tpu.memory_space<vmem>>, vector<1x128xf32>
    %126 = vector.broadcast %125 : vector<1x128xf32> to vector<56x128xf32>
    %127 = arith.addf %124, %126 : vector<56x128xf32>
    %c0_33 = arith.constant 0 : index
    %c0_34 = arith.constant 0 : index
    %128 = vector.load %arg8[%c0_33, %c0_34] : memref<32x128xf32, #tpu.memory_space<vmem>>, vector<32x128xf32>
    %129 = vector.extract_strided_slice %127 {offsets = [0, 0], sizes = [8, 128], strides = [1, 1]} : vector<56x128xf32> to vector<8x128xf32>
    %cst_35 = arith.constant dense<0.000000e+00> : vector<8x128xf32>
    %130 = tpu.matmul %121, %128, %cst_35 {dimension_numbers = #tpu.dot_dimension_numbers<[1], [0], [0], [1], [0, 0, 1, 1], [], []>} : vector<8x32xf32>, vector<32x128xf32>, vector<8x128xf32> -> vector<8x128xf32>
    %131 = arith.addf %129, %130 : vector<8x128xf32>
    %132 = arith.negf %131 : vector<8x128xf32>
    %133 = math.exp %132 : vector<8x128xf32>
    %cst_36 = arith.constant 1.000000e+00 : f32
    %134 = vector.broadcast %cst_36 : f32 to vector<8x128xf32>
    %135 = arith.addf %134, %133 : vector<8x128xf32>
    %136 = arith.divf %134, %135 : vector<8x128xf32>
    %137 = vector.extract_strided_slice %136 {offsets = [0, 0], sizes = [8, 32], strides = [1, 1]} : vector<8x128xf32> to vector<8x32xf32>
    %138 = vector.extract_strided_slice %136 {offsets = [0, 32], sizes = [8, 32], strides = [1, 1]} : vector<8x128xf32> to vector<8x32xf32>
    %139 = vector.extract_strided_slice %136 {offsets = [0, 96], sizes = [8, 32], strides = [1, 1]} : vector<8x128xf32> to vector<8x32xf32>
    %140 = vector.extract_strided_slice %131 {offsets = [0, 64], sizes = [8, 32], strides = [1, 1]} : vector<8x128xf32> to vector<8x32xf32>
    %141 = math.tanh %140 : vector<8x32xf32>
    %142 = arith.mulf %138, %121 : vector<8x32xf32>
    %143 = arith.mulf %137, %141 : vector<8x32xf32>
    %144 = arith.addf %142, %143 : vector<8x32xf32>
    %145 = math.tanh %144 : vector<8x32xf32>
    %146 = arith.mulf %139, %145 : vector<8x32xf32>
    %147 = vector.extract_strided_slice %127 {offsets = [8, 0], sizes = [8, 128], strides = [1, 1]} : vector<56x128xf32> to vector<8x128xf32>
    %cst_37 = arith.constant dense<0.000000e+00> : vector<8x128xf32>
    %148 = tpu.matmul %146, %128, %cst_37 {dimension_numbers = #tpu.dot_dimension_numbers<[1], [0], [0], [1], [0, 0, 1, 1], [], []>} : vector<8x32xf32>, vector<32x128xf32>, vector<8x128xf32> -> vector<8x128xf32>
    %149 = arith.addf %147, %148 : vector<8x128xf32>
    %150 = arith.negf %149 : vector<8x128xf32>
    %151 = math.exp %150 : vector<8x128xf32>
    %cst_38 = arith.constant 1.000000e+00 : f32
    %152 = vector.broadcast %cst_38 : f32 to vector<8x128xf32>
    %153 = arith.addf %152, %151 : vector<8x128xf32>
    %154 = arith.divf %152, %153 : vector<8x128xf32>
    %155 = vector.extract_strided_slice %154 {offsets = [0, 0], sizes = [8, 32], strides = [1, 1]} : vector<8x128xf32> to vector<8x32xf32>
    %156 = vector.extract_strided_slice %154 {offsets = [0, 32], sizes = [8, 32], strides = [1, 1]} : vector<8x128xf32> to vector<8x32xf32>
    %157 = vector.extract_strided_slice %154 {offsets = [0, 96], sizes = [8, 32], strides = [1, 1]} : vector<8x128xf32> to vector<8x32xf32>
    %158 = vector.extract_strided_slice %149 {offsets = [0, 64], sizes = [8, 32], strides = [1, 1]} : vector<8x128xf32> to vector<8x32xf32>
    %159 = math.tanh %158 : vector<8x32xf32>
    %160 = arith.mulf %156, %144 : vector<8x32xf32>
    %161 = arith.mulf %155, %159 : vector<8x32xf32>
    %162 = arith.addf %160, %161 : vector<8x32xf32>
    %163 = math.tanh %162 : vector<8x32xf32>
    %164 = arith.mulf %157, %163 : vector<8x32xf32>
    %165 = vector.extract_strided_slice %127 {offsets = [16, 0], sizes = [8, 128], strides = [1, 1]} : vector<56x128xf32> to vector<8x128xf32>
    %cst_39 = arith.constant dense<0.000000e+00> : vector<8x128xf32>
    %166 = tpu.matmul %164, %128, %cst_39 {dimension_numbers = #tpu.dot_dimension_numbers<[1], [0], [0], [1], [0, 0, 1, 1], [], []>} : vector<8x32xf32>, vector<32x128xf32>, vector<8x128xf32> -> vector<8x128xf32>
    %167 = arith.addf %165, %166 : vector<8x128xf32>
    %168 = arith.negf %167 : vector<8x128xf32>
    %169 = math.exp %168 : vector<8x128xf32>
    %cst_40 = arith.constant 1.000000e+00 : f32
    %170 = vector.broadcast %cst_40 : f32 to vector<8x128xf32>
    %171 = arith.addf %170, %169 : vector<8x128xf32>
    %172 = arith.divf %170, %171 : vector<8x128xf32>
    %173 = vector.extract_strided_slice %172 {offsets = [0, 0], sizes = [8, 32], strides = [1, 1]} : vector<8x128xf32> to vector<8x32xf32>
    %174 = vector.extract_strided_slice %172 {offsets = [0, 32], sizes = [8, 32], strides = [1, 1]} : vector<8x128xf32> to vector<8x32xf32>
    %175 = vector.extract_strided_slice %172 {offsets = [0, 96], sizes = [8, 32], strides = [1, 1]} : vector<8x128xf32> to vector<8x32xf32>
    %176 = vector.extract_strided_slice %167 {offsets = [0, 64], sizes = [8, 32], strides = [1, 1]} : vector<8x128xf32> to vector<8x32xf32>
    %177 = math.tanh %176 : vector<8x32xf32>
    %178 = arith.mulf %174, %162 : vector<8x32xf32>
    %179 = arith.mulf %173, %177 : vector<8x32xf32>
    %180 = arith.addf %178, %179 : vector<8x32xf32>
    %181 = math.tanh %180 : vector<8x32xf32>
    %182 = arith.mulf %175, %181 : vector<8x32xf32>
    %183 = vector.extract_strided_slice %127 {offsets = [24, 0], sizes = [8, 128], strides = [1, 1]} : vector<56x128xf32> to vector<8x128xf32>
    %cst_41 = arith.constant dense<0.000000e+00> : vector<8x128xf32>
    %184 = tpu.matmul %182, %128, %cst_41 {dimension_numbers = #tpu.dot_dimension_numbers<[1], [0], [0], [1], [0, 0, 1, 1], [], []>} : vector<8x32xf32>, vector<32x128xf32>, vector<8x128xf32> -> vector<8x128xf32>
    %185 = arith.addf %183, %184 : vector<8x128xf32>
    %186 = arith.negf %185 : vector<8x128xf32>
    %187 = math.exp %186 : vector<8x128xf32>
    %cst_42 = arith.constant 1.000000e+00 : f32
    %188 = vector.broadcast %cst_42 : f32 to vector<8x128xf32>
    %189 = arith.addf %188, %187 : vector<8x128xf32>
    %190 = arith.divf %188, %189 : vector<8x128xf32>
    %191 = vector.extract_strided_slice %190 {offsets = [0, 0], sizes = [8, 32], strides = [1, 1]} : vector<8x128xf32> to vector<8x32xf32>
    %192 = vector.extract_strided_slice %190 {offsets = [0, 32], sizes = [8, 32], strides = [1, 1]} : vector<8x128xf32> to vector<8x32xf32>
    %193 = vector.extract_strided_slice %190 {offsets = [0, 96], sizes = [8, 32], strides = [1, 1]} : vector<8x128xf32> to vector<8x32xf32>
    %194 = vector.extract_strided_slice %185 {offsets = [0, 64], sizes = [8, 32], strides = [1, 1]} : vector<8x128xf32> to vector<8x32xf32>
    %195 = math.tanh %194 : vector<8x32xf32>
    %196 = arith.mulf %192, %180 : vector<8x32xf32>
    %197 = arith.mulf %191, %195 : vector<8x32xf32>
    %198 = arith.addf %196, %197 : vector<8x32xf32>
    %199 = math.tanh %198 : vector<8x32xf32>
    %200 = arith.mulf %193, %199 : vector<8x32xf32>
    %201 = vector.extract_strided_slice %127 {offsets = [32, 0], sizes = [8, 128], strides = [1, 1]} : vector<56x128xf32> to vector<8x128xf32>
    %cst_43 = arith.constant dense<0.000000e+00> : vector<8x128xf32>
    %202 = tpu.matmul %200, %128, %cst_43 {dimension_numbers = #tpu.dot_dimension_numbers<[1], [0], [0], [1], [0, 0, 1, 1], [], []>} : vector<8x32xf32>, vector<32x128xf32>, vector<8x128xf32> -> vector<8x128xf32>
    %203 = arith.addf %201, %202 : vector<8x128xf32>
    %204 = arith.negf %203 : vector<8x128xf32>
    %205 = math.exp %204 : vector<8x128xf32>
    %cst_44 = arith.constant 1.000000e+00 : f32
    %206 = vector.broadcast %cst_44 : f32 to vector<8x128xf32>
    %207 = arith.addf %206, %205 : vector<8x128xf32>
    %208 = arith.divf %206, %207 : vector<8x128xf32>
    %209 = vector.extract_strided_slice %208 {offsets = [0, 0], sizes = [8, 32], strides = [1, 1]} : vector<8x128xf32> to vector<8x32xf32>
    %210 = vector.extract_strided_slice %208 {offsets = [0, 32], sizes = [8, 32], strides = [1, 1]} : vector<8x128xf32> to vector<8x32xf32>
    %211 = vector.extract_strided_slice %208 {offsets = [0, 96], sizes = [8, 32], strides = [1, 1]} : vector<8x128xf32> to vector<8x32xf32>
    %212 = vector.extract_strided_slice %203 {offsets = [0, 64], sizes = [8, 32], strides = [1, 1]} : vector<8x128xf32> to vector<8x32xf32>
    %213 = math.tanh %212 : vector<8x32xf32>
    %214 = arith.mulf %210, %198 : vector<8x32xf32>
    %215 = arith.mulf %209, %213 : vector<8x32xf32>
    %216 = arith.addf %214, %215 : vector<8x32xf32>
    %217 = math.tanh %216 : vector<8x32xf32>
    %218 = arith.mulf %211, %217 : vector<8x32xf32>
    %219 = vector.extract_strided_slice %127 {offsets = [40, 0], sizes = [8, 128], strides = [1, 1]} : vector<56x128xf32> to vector<8x128xf32>
    %cst_45 = arith.constant dense<0.000000e+00> : vector<8x128xf32>
    %220 = tpu.matmul %218, %128, %cst_45 {dimension_numbers = #tpu.dot_dimension_numbers<[1], [0], [0], [1], [0, 0, 1, 1], [], []>} : vector<8x32xf32>, vector<32x128xf32>, vector<8x128xf32> -> vector<8x128xf32>
    %221 = arith.addf %219, %220 : vector<8x128xf32>
    %222 = arith.negf %221 : vector<8x128xf32>
    %223 = math.exp %222 : vector<8x128xf32>
    %cst_46 = arith.constant 1.000000e+00 : f32
    %224 = vector.broadcast %cst_46 : f32 to vector<8x128xf32>
    %225 = arith.addf %224, %223 : vector<8x128xf32>
    %226 = arith.divf %224, %225 : vector<8x128xf32>
    %227 = vector.extract_strided_slice %226 {offsets = [0, 0], sizes = [8, 32], strides = [1, 1]} : vector<8x128xf32> to vector<8x32xf32>
    %228 = vector.extract_strided_slice %226 {offsets = [0, 32], sizes = [8, 32], strides = [1, 1]} : vector<8x128xf32> to vector<8x32xf32>
    %229 = vector.extract_strided_slice %226 {offsets = [0, 96], sizes = [8, 32], strides = [1, 1]} : vector<8x128xf32> to vector<8x32xf32>
    %230 = vector.extract_strided_slice %221 {offsets = [0, 64], sizes = [8, 32], strides = [1, 1]} : vector<8x128xf32> to vector<8x32xf32>
    %231 = math.tanh %230 : vector<8x32xf32>
    %232 = arith.mulf %228, %216 : vector<8x32xf32>
    %233 = arith.mulf %227, %231 : vector<8x32xf32>
    %234 = arith.addf %232, %233 : vector<8x32xf32>
    %235 = math.tanh %234 : vector<8x32xf32>
    %236 = arith.mulf %229, %235 : vector<8x32xf32>
    %237 = vector.extract_strided_slice %127 {offsets = [48, 0], sizes = [8, 128], strides = [1, 1]} : vector<56x128xf32> to vector<8x128xf32>
    %cst_47 = arith.constant dense<0.000000e+00> : vector<8x128xf32>
    %238 = tpu.matmul %236, %128, %cst_47 {dimension_numbers = #tpu.dot_dimension_numbers<[1], [0], [0], [1], [0, 0, 1, 1], [], []>} : vector<8x32xf32>, vector<32x128xf32>, vector<8x128xf32> -> vector<8x128xf32>
    %239 = arith.addf %237, %238 : vector<8x128xf32>
    %240 = arith.negf %239 : vector<8x128xf32>
    %241 = math.exp %240 : vector<8x128xf32>
    %cst_48 = arith.constant 1.000000e+00 : f32
    %242 = vector.broadcast %cst_48 : f32 to vector<8x128xf32>
    %243 = arith.addf %242, %241 : vector<8x128xf32>
    %244 = arith.divf %242, %243 : vector<8x128xf32>
    %245 = vector.extract_strided_slice %244 {offsets = [0, 0], sizes = [8, 32], strides = [1, 1]} : vector<8x128xf32> to vector<8x32xf32>
    %246 = vector.extract_strided_slice %244 {offsets = [0, 32], sizes = [8, 32], strides = [1, 1]} : vector<8x128xf32> to vector<8x32xf32>
    %247 = vector.extract_strided_slice %244 {offsets = [0, 96], sizes = [8, 32], strides = [1, 1]} : vector<8x128xf32> to vector<8x32xf32>
    %248 = vector.extract_strided_slice %239 {offsets = [0, 64], sizes = [8, 32], strides = [1, 1]} : vector<8x128xf32> to vector<8x32xf32>
    %249 = math.tanh %248 : vector<8x32xf32>
    %250 = arith.mulf %246, %234 : vector<8x32xf32>
    %251 = arith.mulf %245, %249 : vector<8x32xf32>
    %252 = arith.addf %250, %251 : vector<8x32xf32>
    %253 = math.tanh %252 : vector<8x32xf32>
    %254 = arith.mulf %247, %253 : vector<8x32xf32>
    %255 = tpu.concatenate %146, %164, %182, %200, %218, %236, %254 in 0 : vector<8x32xf32>, vector<8x32xf32>, vector<8x32xf32>, vector<8x32xf32>, vector<8x32xf32>, vector<8x32xf32>, vector<8x32xf32> -> vector<56x32xf32>
    %c0_49 = arith.constant 0 : index
    %c0_50 = arith.constant 0 : index
    %256 = vector.load %arg10[%c0_49, %c0_50] : memref<32x128xf32, #tpu.memory_space<vmem>>, vector<32x128xf32>
    %cst_51 = arith.constant dense<0.000000e+00> : vector<56x128xf32>
    %257 = tpu.matmul %255, %256, %cst_51 {dimension_numbers = #tpu.dot_dimension_numbers<[1], [0], [0], [1], [0, 0, 1, 1], [], []>} : vector<56x32xf32>, vector<32x128xf32>, vector<56x128xf32> -> vector<56x128xf32>
    %c0_52 = arith.constant 0 : index
    %c0_53 = arith.constant 0 : index
    %258 = vector.load %arg11[%c0_52, %c0_53] : memref<1x128xf32, #tpu.memory_space<vmem>>, vector<1x128xf32>
    %259 = vector.broadcast %258 : vector<1x128xf32> to vector<56x128xf32>
    %260 = arith.addf %257, %259 : vector<56x128xf32>
    %c0_54 = arith.constant 0 : index
    %c0_55 = arith.constant 0 : index
    %261 = vector.load %arg12[%c0_54, %c0_55] : memref<56x128xf32, #tpu.memory_space<vmem>>, vector<56x128xf32>
    tpu.vector_store %arg12[%c0_54, %c0_55], %260 {strides = array<i32>} : memref<56x128xf32, #tpu.memory_space<vmem>>, vector<56x128xf32>,
    return
  }
}

</mosaic_0001>

<bundles_post_ra>
// kernel: tpu_custom_call.1
= control target key start
LH: loop header
LB: loop body
LE: loop exit
PB: predicated region body
PF: predicated region fallthrough
CT: control target
= control target key end

     0   :  { %17 = vsyncpa [#allocation3], 0  ;;  %s1894_s0 = inlined_call_operand.vmem [shape: f32[48,16], index: 0, kind: input, shape index: {}]   ;;  %s1895_s1 = inlined_call_operand.vmem [shape: f32[56,16], index: 1, kind: input, shape index: {}]   ;;  %s1896_s2 = inlined_call_operand.hbm [shape: f32[16,128], index: 2, kind: input, shape index: {}]   ;;  %s1897_s3 = inlined_call_operand.vmem [shape: f32[32,128], index: 3, kind: input, shape index: {}]   ;;  %s1898_s4 = inlined_call_operand.vmem [shape: f32[1,128], index: 4, kind: input, shape index: {}]   ;;  %s1899_s5 = inlined_call_operand.vmem [shape: f32[32,32], index: 5, kind: input, shape index: {}]   ;;  %s1900_s6 = inlined_call_operand.hbm [shape: f32[1,32], index: 6, kind: input, shape index: {}]   ;;  %s1901_s7 = inlined_call_operand.hbm [shape: f32[16,128], index: 7, kind: input, shape index: {}]   ;;  %s1902_s8 = inlined_call_operand.vmem [shape: f32[32,128], index: 8, kind: input, shape index: {}]   ;;  %s1903_s9 = inlined_call_operand.hbm [shape: f32[1,128], index: 9, kind: input, shape index: {}]   ;;  %s1904_s10 = inlined_call_operand.vmem [shape: f32[32,128], index: 10, kind: input, shape index: {}]   ;;  %s1905_s11 = inlined_call_operand.hbm [shape: f32[1,128], index: 11, kind: input, shape index: {}]   ;;  %s1906_s12 = inlined_call_operand.hbm [shape: f32[56,128], index: 12, kind: output, shape index: {}]  }
   0x1   :  { %18 = vsyncpa [#allocation6], 0 }
   0x2   :  { %19 = vsyncpa [#allocation9], 0  ;;  %s49_s23 = sshll.u32 %s1900_s6, 4  ;;  %s50_s23 = int_to_ptr.hbm [resolvable:$true] %s49_s23 }
   0x3   :  { %20 = vsyncpa [#allocation4], 0  ;;  %s1512_s24 = smov [#allocation5]   ;;  %s75_s28 = sshll.u32 %s1903_s9, 4  ;;  %s76_s28 = int_to_ptr.hbm [resolvable:$true] %s75_s28 }
   0x4   :  { %s51_s25 = sshll.u32 %s1512_s24, 4  ;;  %s1513_s29 = smov [#allocation8]   ;;  %s52_s25 = int_to_ptr.vmem [resolvable:$true] %s51_s25 }
   0x5   :  { %54 = dma.hbm_to_vmem [thread:$0]  %s50_s23, 16, %s52_s25, [#allocation6]  }
   0x6   :  { %s77_s30 = sshll.u32 %s1513_s29, 4  ;;  %s29_s15 = sshll.u32 %s1896_s2, 4  ;;  %s78_s30 = int_to_ptr.vmem [resolvable:$true] %s77_s30  ;;  %s30_s15 = int_to_ptr.hbm [resolvable:$true] %s29_s15 }
   0x7   :  { %80 = dma.hbm_to_vmem [thread:$0]  %s76_s28, 16, %s78_s30, [#allocation9]  }
   0x8   :  { %s1514_s6 = smov [#allocation2]   ;;  %s59_s19 = sshll.u32 %s1901_s7, 4  ;;  %s60_s19 = int_to_ptr.hbm [resolvable:$true] %s59_s19 }
   0x9   :  { %s31_s16 = sshll.u32 %s1514_s6, 4  ;;  %s1515_s20 = smov 128   ;;  %s32_s16 = int_to_ptr.vmem [resolvable:$true] %s31_s16 }
   0xa   :  { %s1516_s9 = smov 8   ;;  %s1517_s21 = smov [#allocation7]  }
   0xb   :  { %37 = dma.hbm_to_vmem [thread:$0]  %s30_s15, 256, %s32_s16, [#allocation3], %s1515_s20, %s1515_s20, %s1516_s9  }
   0xc   :  { %s61_s22 = sshll.u32 %s1517_s21, 4  ;;  %s88_s24 = sshll.u32 %s1905_s11, 4  ;;  %s62_s22 = int_to_ptr.vmem [resolvable:$true] %s61_s22  ;;  %s89_s24 = int_to_ptr.hbm [resolvable:$true] %s88_s24 }
   0xd   :  { %67 = dma.hbm_to_vmem [thread:$0]  %s60_s19, 256, %s62_s22, [#allocation6], %s1515_s20, %s1515_s20, %s1516_s9  }
   0xe   :  { %s1518_s7 = smov [#allocation10]  }
   0xf   :  { %s90_s25 = sshll.u32 %s1518_s7, 4  ;;  %s91_s25 = int_to_ptr.vmem [resolvable:$true] %s90_s25 }
  0x10   :  { %93 = dma.hbm_to_vmem [thread:$0]  %s89_s24, 16, %s91_s25, [#allocation9]  }
  0x11   :  { %1504 = dma.done.wait [#allocation3], 256  }
  0x12   :  { %1505 = vsyncadd [#allocation3], 4294967040 }
  0x13   :  { %1506 = dma.done.wait [#allocation6], 272  }
  0x14   :  { %1507 = vsyncadd [#allocation6], 4294967024 }
  0x15   :  { %1508 = dma.done.wait [#allocation9], 32  }
  0x16   :  { %1509 = vsyncadd [#allocation9], 4294967264  ;;  %v121_v0 = vld [vmem:[#allocation2 + $0x8] sm:$0xff]  ;;  %v120_v1 = vld [vmem:[#allocation2] sm:$0xff]  ;;  %vm126_vm0 = vcmask 130048   ;;  %v1519_v8 = vmov 0.0  }
  0x17   :  { %1237 = vmatpush.msra.mxu1 %v121_v0  ;;  %v116_v2 = vld [vmem:[%s1894_s0 + $0x10] sm:$0xff]  ;;  %v1615_v3 = vld [vmem:[%s1897_s3 + $0x18] sm:$0xff]  ;;  %159 = vmatpush.msra.mxu0 %v121_v0  ;;  %v114_v4 = vld [vmem:[%s1894_s0] sm:$0xff]  ;;  %s1520_s19 = smov 64   ;;  %vm184_vm5 = vcmask 261120   ;;  %s1176_s22 = sshll.u32 %s1906_s12, 4  ;;  %s1177_s22 = int_to_ptr.hbm [resolvable:$true] %s1176_s22 }
  0x18   :  { %1238 = vmatpush.msra.mxu3 %v121_v0  ;;  %452 = vmatpush.msra.mxu2 %v1615_v3  ;;  %v1625_v5 = vld [vmem:[%s1897_s3 + $0x10] sm:$0xff]  ;;  %v1632_v6 = vld [vmem:[%s1897_s3 + $0x8] sm:$0xff]  ;;  %v1640_v7 = vld [vmem:[%s1897_s3] sm:$0xff] }
  0x19   :  { %1239 = vmatpush.msra.mxu1 %v120_v1  ;;  %160 = vmatpush.msra.mxu0 %v120_v1  ;;  %v1662_v11 = vld [vmem:[%s1898_s4] ss:$0 sm:$0xff]  ;;  %s1521_s4 = smov 32   ;;  %v115_v35 = vld [vmem:[%s1894_s0 + $0x8] sm:$0xff]  ;;  %v117_v63 = vld [vmem:[%s1894_s0 + $0x18] sm:$0xff] }
  0x1a   :  { %1193 = vmatmul.msk.f32.vlgmr.msra.gmra.mxu1 %vm126_vm0, %v116_v2  ;;  %1191 = vmatmul.msk.f32.vlgmr.msra.gmra.mxu0 %vm126_vm0, %v114_v4  ;;  %v118_v0 = vld [vmem:[%s1894_s0 + $0x20] sm:$0xff] }
  0x1b   :  { %200 = vmatpush.msrb.mxu1 %v1615_v3  ;;  %1240 = vmatpush.msra.mxu3 %v120_v1  ;;  %v119_v1 = vld [vmem:[%s1894_s0 + $0x28] sm:$0xff] }
  0x1c   :  { %453 = vmatpush.msra.mxu2 %v1625_v5  ;;  %1194 = vmatmul.msk.f32.vlgmr.msra.gmra.mxu3 %vm126_vm0, %v117_v63 }
  0x1d   :  { %326 = vmatpush.msrb.mxu3 %v1615_v3  ;;  %201 = vmatpush.msrb.mxu1 %v1625_v5 }
  0x1e   :  { %454 = vmatpush.msra.mxu2 %v1632_v6 }
  0x1f   :  { %327 = vmatpush.msrb.mxu3 %v1625_v5  ;;  %202 = vmatpush.msrb.mxu1 %v1632_v6 }
  0x20   :  { %455 = vmatpush.msra.mxu2 %v1640_v7 }
  0x21   :  { %328 = vmatpush.msrb.mxu3 %v1632_v6  ;;  %203 = vmatpush.msrb.mxu1 %v1640_v7 }
  0x22   :  { %204 = vmatmul.f32.vlgmr.msrb.gmra.mxu1 %v1519_v8  ;;  %1192 = vmatmul.msk.f32.gmra.mxu0 %vm126_vm0, %v115_v35 }
  0x23   :  { %329 = vmatpush.msrb.mxu3 %v1640_v7  ;;  %263 = vmatpush.msra.mxu1 %v1615_v3 }
  0x24   :  { %1195 = vmatmul.msk.f32.gmra.mxu3 %vm126_vm0, %v118_v0 }
  0x25   :  { %264 = vmatpush.msra.mxu1 %v1625_v5  ;;  %515 = vmatpush.msra.mxu3 %v1615_v3 }
  0x27   :  { %265 = vmatpush.msra.mxu1 %v1632_v6  ;;  %516 = vmatpush.msra.mxu3 %v1625_v5 }
  0x29   :  { %266 = vmatpush.msra.mxu1 %v1640_v7  ;;  %517 = vmatpush.msra.mxu3 %v1632_v6 }
  0x2b   :  { %389 = vmatpush.msrb.mxu1 %v1615_v3  ;;  %518 = vmatpush.msra.mxu3 %v1640_v7 }
  0x2c   :  { %1196 = vmatmul.msk.f32.gmra.mxu3 %vm126_vm0, %v119_v1 }
  0x2d   :  { %390 = vmatpush.msrb.mxu1 %v1625_v5 }
  0x2f   :  { %391 = vmatpush.msrb.mxu1 %v1632_v6 }
  0x31   :  { %392 = vmatpush.msrb.mxu1 %v1640_v7 }
  0x97   :  { %v1657_v9 = vpop.f32.mrf.mxu1  ;;  %v162_v10 = vpop.f32.mrf.mxu0 }
  0x98   :  { %v163_v12 = vadd.f32 %v1662_v11, %v162_v10  ;;  %v169_v7 = vadd.f32 %v1662_v11, %v1657_v9 }
  0x9f   :  { %v205_v13 = vpop.f32.mrf.mxu1  ;;  %v165_v39 = vpop.f32.mrf.mxu0 }
  0xa0   :  { %v208_v14 = vadd.f32 %v205_v13, %v163_v12  ;;  %v166_v40 = vadd.f32 %v1662_v11, %v165_v39  ;;  %v171_v5 = vpop.f32.mrf.mxu3 }
  0xa1   :  { %v172_v35 = vadd.f32 %v1662_v11, %v171_v5 }
  0xa2   :  { %1256 = vtanh.f32 %v208_v14  ;;  %v1197_v16 = vmul.f32 -1.442695, %v208_v14 }
  0xa4   :  { %1258 = vpow2.f32 %v1197_v16 }
  0xa8   :  { %v1257_v15 = vpop.eup %1256  ;;  %v1696_v8 = vpop.f32.mrf.mxu3 }
  0xa9   :  { %231 = vrot.lane.b32.xlu0 %v1257_v15, %s1520_s19 }
  0xaa   :  { %v1259_v17 = vpop.eup %1258 }
  0xab   :  { %v212_v18 = vadd.f32 1.0, %v1259_v17 }
  0xad   :  { %1260 = vrcp.f32 %v212_v18  ;;  %v224_v24 = vand.u32 2147483648, %v212_v18  ;;  %vm218_vm2 = vweird.f32 %v212_v18  ;;  %v222_v25 = vand.u32 2147483647, %v212_v18 }
  0xaf   :  { %v225_v27 = vor.u32 1.1754944e-38, %v224_v24  ;;  %vm223_vm4 = vcmp.eq.f32.partialorder %v222_v25, 8.507059e+37 }
  0xb0   :  { %v1698_v6 = vpop.f32.mrf.mxu3 }
  0xb3   :  { %v1261_v19 = vpop.eup %1260 }
  0xb4   :  { %v214_v20 = vmul.f32 %v1261_v19, %v212_v18  ;;  %vm219_vm1 = vweird.f32 %v1261_v19 }
  0xb5   :  { %vm220_vm3 = vmor %vm218_vm2, %vm219_vm1 }
  0xb6   :  { %v215_v21 = vsub.f32 1.0, %v214_v20 }
  0xb8   :  { %v216_v22 = vmul.f32 %v1261_v19, %v215_v21 }
  0xba   :  { %v217_v23 = vadd.f32 %v1261_v19, %v216_v22 }
  0xbc   :  { %v221_v26 = vsel %vm220_vm3, %v1261_v19, %v217_v23 }
  0xbd   :  { %v226_v29 = vsel %vm223_vm4, %v225_v27, %v221_v26 }
  0xbe   :  { %v229_v31 = vmul.f32 0.0, %v226_v29 }
 0x11b   :  { %v232_v28 = vpop.permute.xlu0 %231 }
 0x11c   :  { %v234_v30 = vmul.f32 %v232_v28, %v226_v29 }
 0x11e   :  { %236 = vrot.lane.b32.xlu0 %v234_v30, %s1521_s4 }
 0x190   :  { %v237_v32 = vpop.permute.xlu0 %236 }
 0x191   :  { %v239_v33 = vadd.f32 %v237_v32, %v229_v31 }
 0x193   :  { %1262 = vtanh.f32 %v239_v33 }
 0x199   :  { %v1263_v34 = vpop.eup %1262 }
 0x19a   :  { %242 = vrot.lane.b32.xlu1 %v1263_v34, %s1520_s19 }
 0x20c   :  { %v243_v36 = vpop.permute.xlu1 %242 }
 0x20d   :  { %v245_v37 = vmul.f32 %v243_v36, %v226_v29 }
 0x20f   :  { %247 = vrot.lane.b32.xlu1 %v245_v37, %s1521_s4 }
 0x281   :  { %v248_v38 = vpop.permute.xlu1 %247 }
 0x282   :  { %1198 = vmatmul.msk.f32.vlgmr.msra.gmra.mxu1 %vm184_vm5, %v248_v38 }
 0x2ff   :  { %v268_v41 = vpop.f32.mrf.mxu1 }
 0x300   :  { %v271_v42 = vadd.f32 %v268_v41, %v166_v40 }
 0x302   :  { %1264 = vtanh.f32 %v271_v42  ;;  %v1199_v44 = vmul.f32 -1.442695, %v271_v42 }
 0x304   :  { %1266 = vpow2.f32 %v1199_v44 }
 0x308   :  { %v1265_v43 = vpop.eup %1264 }
 0x309   :  { %294 = vrot.lane.b32.xlu2 %v1265_v43, %s1520_s19 }
 0x30a   :  { %v1267_v45 = vpop.eup %1266 }
 0x30b   :  { %v275_v46 = vadd.f32 1.0, %v1267_v45 }
 0x30d   :  { %1268 = vrcp.f32 %v275_v46  ;;  %v287_v52 = vand.u32 2147483648, %v275_v46  ;;  %vm281_vm7 = vweird.f32 %v275_v46  ;;  %v285_v53 = vand.u32 2147483647, %v275_v46 }
 0x30f   :  { %v288_v55 = vor.u32 1.1754944e-38, %v287_v52  ;;  %vm286_vm9 = vcmp.eq.f32.partialorder %v285_v53, 8.507059e+37 }
 0x313   :  { %v1269_v47 = vpop.eup %1268 }
 0x314   :  { %v277_v48 = vmul.f32 %v1269_v47, %v275_v46  ;;  %vm282_vm6 = vweird.f32 %v1269_v47 }
 0x315   :  { %vm283_vm8 = vmor %vm281_vm7, %vm282_vm6 }
 0x316   :  { %v278_v49 = vsub.f32 1.0, %v277_v48 }
 0x318   :  { %v279_v50 = vmul.f32 %v1269_v47, %v278_v49 }
 0x31a   :  { %v280_v51 = vadd.f32 %v1269_v47, %v279_v50 }
 0x31c   :  { %v284_v54 = vsel %vm283_vm8, %v1269_v47, %v280_v51 }
 0x31d   :  { %v289_v57 = vsel %vm286_vm9, %v288_v55, %v284_v54 }
 0x31e   :  { %v292_v59 = vmul.f32 %v289_v57, %v239_v33 }
 0x363   :  { %v295_v56 = vpop.permute.xlu2 %294 }
 0x364   :  { %v297_v58 = vmul.f32 %v295_v56, %v289_v57 }
 0x366   :  { %299 = vrot.lane.b32.xlu2 %v297_v58, %s1521_s4 }
 0x3c0   :  { %v300_v60 = vpop.permute.xlu2 %299 }
 0x3c1   :  { %v302_v61 = vadd.f32 %v300_v60, %v292_v59 }
 0x3c3   :  { %1270 = vtanh.f32 %v302_v61 }
 0x3c9   :  { %v1271_v62 = vpop.eup %1270 }
 0x3ca   :  { %305 = vrot.lane.b32.xlu0 %v1271_v62, %s1520_s19 }
 0x43c   :  { %v306_v2 = vpop.permute.xlu0 %305 }
 0x43d   :  { %v308_v3 = vmul.f32 %v306_v2, %v289_v57 }
 0x43f   :  { %310 = vrot.lane.b32.xlu1 %v308_v3, %s1521_s4 }
 0x4b1   :  { %v311_v4 = vpop.permute.xlu1 %310 }
 0x4b2   :  { %1200 = vmatmul.msk.f32.vlgmr.msrb.gmra.mxu3 %vm184_vm5, %v311_v4 }
 0x535   :  { %v331_v10 = vpop.f32.mrf.mxu3 }
 0x536   :  { %v334_v12 = vadd.f32 %v331_v10, %v169_v7 }
 0x538   :  { %1272 = vtanh.f32 %v334_v12  ;;  %v1201_v14 = vmul.f32 -1.442695, %v334_v12 }
 0x53a   :  { %1274 = vpow2.f32 %v1201_v14 }
 0x53e   :  { %v1273_v13 = vpop.eup %1272 }
 0x53f   :  { %357 = vrot.lane.b32.xlu2 %v1273_v13, %s1520_s19 }
 0x540   :  { %v1275_v15 = vpop.eup %1274 }
 0x541   :  { %v338_v16 = vadd.f32 1.0, %v1275_v15 }
 0x543   :  { %1276 = vrcp.f32 %v338_v16  ;;  %v350_v22 = vand.u32 2147483648, %v338_v16  ;;  %vm344_vm11 = vweird.f32 %v338_v16  ;;  %v348_v9 = vand.u32 2147483647, %v338_v16 }
 0x545   :  { %v351_v24 = vor.u32 1.1754944e-38, %v350_v22  ;;  %vm349_vm13 = vcmp.eq.f32.partialorder %v348_v9, 8.507059e+37 }
 0x549   :  { %v1277_v17 = vpop.eup %1276 }
 0x54a   :  { %v340_v18 = vmul.f32 %v1277_v17, %v338_v16  ;;  %vm345_vm10 = vweird.f32 %v1277_v17 }
 0x54b   :  { %vm346_vm12 = vmor %vm344_vm11, %vm345_vm10 }
 0x54c   :  { %v341_v19 = vsub.f32 1.0, %v340_v18 }
 0x54e   :  { %v342_v20 = vmul.f32 %v1277_v17, %v341_v19 }
 0x550   :  { %v343_v21 = vadd.f32 %v1277_v17, %v342_v20 }
 0x552   :  { %v347_v23 = vsel %vm346_vm12, %v1277_v17, %v343_v21 }
 0x553   :  { %v352_v26 = vsel %vm349_vm13, %v351_v24, %v347_v23 }
 0x554   :  { %v355_v28 = vmul.f32 %v352_v26, %v302_v61  ;;  %v175_v61 = vadd.f32 %v1662_v11, %v1696_v8 }
 0x599   :  { %v358_v25 = vpop.permute.xlu2 %357 }
 0x59a   :  { %v360_v27 = vmul.f32 %v358_v25, %v352_v26  ;;  %v178_v25 = vadd.f32 %v1662_v11, %v1698_v6 }
 0x59c   :  { %362 = vrot.lane.b32.xlu0 %v360_v27, %s1521_s4 }
 0x60e   :  { %v363_v29 = vpop.permute.xlu0 %362 }
 0x60f   :  { %v365_v30 = vadd.f32 %v363_v29, %v355_v28 }
 0x611   :  { %1278 = vtanh.f32 %v365_v30 }
 0x617   :  { %v1279_v31 = vpop.eup %1278 }
 0x618   :  { %368 = vrot.lane.b32.xlu1 %v1279_v31, %s1520_s19 }
 0x68a   :  { %v369_v32 = vpop.permute.xlu1 %368 }
 0x68b   :  { %v371_v33 = vmul.f32 %v369_v32, %v352_v26 }
 0x68d   :  { %373 = vrot.lane.b32.xlu2 %v371_v33, %s1521_s4 }
 0x6e7   :  { %v374_v34 = vpop.permute.xlu2 %373 }
 0x6e8   :  { %1202 = vmatmul.msk.f32.vlgmr.msrb.gmra.mxu1 %vm184_vm5, %v374_v34 }
 0x765   :  { %v394_v36 = vpop.f32.mrf.mxu1 }
 0x766   :  { %v397_v37 = vadd.f32 %v394_v36, %v172_v35 }
 0x768   :  { %1280 = vtanh.f32 %v397_v37  ;;  %v1203_v39 = vmul.f32 -1.442695, %v397_v37 }
 0x76a   :  { %1282 = vpow2.f32 %v1203_v39 }
 0x76e   :  { %v1281_v38 = vpop.eup %1280 }
 0x76f   :  { %420 = vrot.lane.b32.xlu0 %v1281_v38, %s1520_s19 }
 0x770   :  { %v1283_v40 = vpop.eup %1282 }
 0x771   :  { %v401_v41 = vadd.f32 1.0, %v1283_v40 }
 0x773   :  { %1284 = vrcp.f32 %v401_v41  ;;  %v413_v47 = vand.u32 2147483648, %v401_v41  ;;  %vm407_vm15 = vweird.f32 %v401_v41  ;;  %v411_v48 = vand.u32 2147483647, %v401_v41 }
 0x775   :  { %v414_v50 = vor.u32 1.1754944e-38, %v413_v47  ;;  %vm412_vm2 = vcmp.eq.f32.partialorder %v411_v48, 8.507059e+37  ;;  %v563_v47 = vld [vmem:[%s1899_s5 + $0x10] sm:$0xff]  ;;  %v562_v48 = vld [vmem:[%s1899_s5 + $0x8] sm:$0xff] }
 0x779   :  { %v1285_v42 = vpop.eup %1284 }
 0x77a   :  { %v403_v43 = vmul.f32 %v1285_v42, %v401_v41  ;;  %vm408_vm14 = vweird.f32 %v1285_v42 }
 0x77b   :  { %vm409_vm1 = vmor %vm407_vm15, %vm408_vm14 }
 0x77c   :  { %v404_v44 = vsub.f32 1.0, %v403_v43 }
 0x77e   :  { %v405_v45 = vmul.f32 %v1285_v42, %v404_v44 }
 0x780   :  { %v406_v46 = vadd.f32 %v1285_v42, %v405_v45 }
 0x782   :  { %v410_v49 = vsel %vm409_vm1, %v1285_v42, %v406_v46  ;;  %v564_v46 = vld [vmem:[%s1899_s5 + $0x18] sm:$0xff] }
 0x783   :  { %v415_v52 = vsel %vm412_vm2, %v414_v50, %v410_v49  ;;  %586 = vmatpush.msra.mxu1 %v564_v46  ;;  %v561_v49 = vld [vmem:[%s1899_s5] sm:$0xff] }
 0x784   :  { %v418_v54 = vmul.f32 %v415_v52, %v365_v30 }
 0x785   :  { %587 = vmatpush.msra.mxu1 %v563_v47 }
 0x787   :  { %588 = vmatpush.msra.mxu1 %v562_v48 }
 0x789   :  { %589 = vmatpush.msra.mxu1 %v561_v49 }
 0x7e1   :  { %v421_v51 = vpop.permute.xlu0 %420 }
 0x7e2   :  { %v423_v53 = vmul.f32 %v421_v51, %v415_v52 }
 0x7e4   :  { %425 = vrot.lane.b32.xlu1 %v423_v53, %s1521_s4  ;;  %v1741_v53 = vld [vmem:[%s1902_s8 + $0x18] sm:$0xff] }
 0x7e5   :  { %685 = vmatpush.msrb.mxu3 %v1741_v53  ;;  %751 = vmatpush.msrb.mxu1 %v1741_v53 }
 0x856   :  { %v426_v55 = vpop.permute.xlu1 %425 }
 0x857   :  { %v428_v56 = vadd.f32 %v426_v55, %v418_v54  ;;  %v601_v54 = vld [vmem:[#allocation7] sm:$0xff] }
 0x858   :  { %v1747_v55 = vld [vmem:[%s1902_s8 + $0x10] sm:$0xff] }
 0x859   :  { %1286 = vtanh.f32 %v428_v56  ;;  %686 = vmatpush.msrb.mxu3 %v1747_v55  ;;  %752 = vmatpush.msrb.mxu1 %v1747_v55 }
 0x85f   :  { %v1287_v57 = vpop.eup %1286 }
 0x860   :  { %431 = vrot.lane.b32.xlu2 %v1287_v57, %s1520_s19 }
 0x8ba   :  { %v432_v58 = vpop.permute.xlu2 %431 }
 0x8bb   :  { %v434_v59 = vmul.f32 %v432_v58, %v415_v52  ;;  %v602_v52 = vld [vmem:[#allocation7 + $0x8] sm:$0xff] }
 0x8bc   :  { %642 = vmatpush.msrb.mxu2 %v602_v52  ;;  %v594_v58 = vld [vmem:[%s1895_s1] sm:$0xff] }
 0x8bd   :  { %436 = vrot.lane.b32.xlu0 %v434_v59, %s1521_s4  ;;  %v1767_v59 = vld [vmem:[%s1902_s8] sm:$0xff] }
 0x8be   :  { %643 = vmatpush.msrb.mxu2 %v601_v54 }
 0x92f   :  { %v437_v60 = vpop.permute.xlu0 %436 }
 0x930   :  { %1204 = vmatmul.msk.f32.vlgmr.msra.gmra.mxu2 %vm184_vm5, %v437_v60  ;;  %v1253_v60 = vld [vmem:[#allocation5] ss:$0 sm:$0xff] }
 0x938   :  { %1209 = vmatmul.msk.f32.vlgmr.msrb.gmra.mxu2 %vm126_vm0, %v594_v58 }
 0x9b3   :  { %v457_v62 = vpop.f32.mrf.mxu2 }
 0x9b4   :  { %v460_v63 = vadd.f32 %v457_v62, %v175_v61 }
 0x9b6   :  { %1288 = vtanh.f32 %v460_v63  ;;  %v1205_v1 = vmul.f32 -1.442695, %v460_v63  ;;  %v1785_v63 = vld [vmem:[#allocation8] ss:$0 sm:$0xff] }
 0x9b8   :  { %1290 = vpow2.f32 %v1205_v1 }
 0x9bc   :  { %v1289_v0 = vpop.eup %1288 }
 0x9bd   :  { %483 = vrot.lane.b32.xlu1 %v1289_v0, %s1520_s19  ;;  %v645_v0 = vpop.f32.mrf.mxu2 }
 0x9be   :  { %v1291_v2 = vpop.eup %1290  ;;  %v646_v1 = vadd.f32 %v1785_v63, %v645_v0 }
 0x9bf   :  { %v464_v3 = vadd.f32 1.0, %v1291_v2 }
 0x9c1   :  { %1292 = vrcp.f32 %v464_v3  ;;  %v476_v13 = vand.u32 2147483648, %v464_v3  ;;  %vm470_vm4 = vweird.f32 %v464_v3  ;;  %v474_v8 = vand.u32 2147483647, %v464_v3 }
 0x9c3   :  { %v477_v15 = vor.u32 1.1754944e-38, %v476_v13  ;;  %vm475_vm7 = vcmp.eq.f32.partialorder %v474_v8, 8.507059e+37 }
 0x9c7   :  { %v1293_v4 = vpop.eup %1292 }
 0x9c8   :  { %v466_v5 = vmul.f32 %v1293_v4, %v464_v3  ;;  %vm471_vm3 = vweird.f32 %v1293_v4 }
 0x9c9   :  { %vm472_vm6 = vmor %vm470_vm4, %vm471_vm3 }
 0x9ca   :  { %v467_v7 = vsub.f32 1.0, %v466_v5 }
 0x9cc   :  { %v468_v10 = vmul.f32 %v1293_v4, %v467_v7 }
 0x9ce   :  { %v469_v12 = vadd.f32 %v1293_v4, %v468_v10 }
 0x9d0   :  { %v473_v14 = vsel %vm472_vm6, %v1293_v4, %v469_v12 }
 0x9d1   :  { %v478_v17 = vsel %vm475_vm7, %v477_v15, %v473_v14 }
 0x9d2   :  { %v481_v19 = vmul.f32 %v478_v17, %v428_v56  ;;  %v1752_v56 = vld [vmem:[%s1902_s8 + $0x8] sm:$0xff] }
 0x9d3   :  { %687 = vmatpush.msrb.mxu3 %v1752_v56  ;;  %753 = vmatpush.msrb.mxu1 %v1752_v56 }
 0x9d5   :  { %688 = vmatpush.msrb.mxu3 %v1767_v59  ;;  %754 = vmatpush.msrb.mxu1 %v1767_v59 }
 0xa2f   :  { %v484_v16 = vpop.permute.xlu1 %483 }
 0xa30   :  { %v486_v18 = vmul.f32 %v484_v16, %v478_v17 }
 0xa32   :  { %488 = vrot.lane.b32.xlu2 %v486_v18, %s1521_s4 }
 0xa8c   :  { %v489_v20 = vpop.permute.xlu2 %488 }
 0xa8d   :  { %v491_v21 = vadd.f32 %v489_v20, %v481_v19 }
 0xa8f   :  { %1294 = vtanh.f32 %v491_v21 }
 0xa95   :  { %v1295_v22 = vpop.eup %1294 }
 0xa96   :  { %494 = vrot.lane.b32.xlu0 %v1295_v22, %s1520_s19 }
 0xb08   :  { %v495_v9 = vpop.permute.xlu0 %494 }
 0xb09   :  { %v497_v23 = vmul.f32 %v495_v9, %v478_v17 }
 0xb0b   :  { %499 = vrot.lane.b32.xlu1 %v497_v23, %s1521_s4 }
 0xb7d   :  { %v500_v24 = vpop.permute.xlu1 %499 }
 0xb7e   :  { %1206 = vmatmul.msk.f32.vlgmr.msra.gmra.mxu3 %vm184_vm5, %v500_v24 }
 0xb7f   :  { %814 = vmatpush.msra.mxu3 %v1741_v53 }
 0xb81   :  { %815 = vmatpush.msra.mxu3 %v1747_v55 }
 0xb83   :  { %816 = vmatpush.msra.mxu3 %v1752_v56 }
 0xb85   :  { %817 = vmatpush.msra.mxu3 %v1767_v59 }
 0xc01   :  { %v520_v26 = vpop.f32.mrf.mxu3 }
 0xc02   :  { %v523_v27 = vadd.f32 %v520_v26, %v178_v25 }
 0xc04   :  { %1296 = vtanh.f32 %v523_v27  ;;  %v1207_v29 = vmul.f32 -1.442695, %v523_v27  ;;  %v595_v27 = vld [vmem:[%s1895_s1 + $0x8] sm:$0xff] }
 0xc05   :  { %1210 = vmatmul.msk.f32.gmra.mxu2 %vm126_vm0, %v595_v27 }
 0xc06   :  { %1298 = vpow2.f32 %v1207_v29  ;;  %v1114_v29 = vld [vmem:[%s1904_s10 + $0x10] sm:$0xff] }
 0xc0a   :  { %v1297_v28 = vpop.eup %1296 }
 0xc0b   :  { %546 = vrot.lane.b32.xlu2 %v1297_v28, %s1520_s19  ;;  %v1115_v28 = vld [vmem:[%s1904_s10 + $0x18] sm:$0xff] }
 0xc0c   :  { %v1299_v30 = vpop.eup %1298  ;;  %1137 = vmatpush.msrb.mxu0 %v1115_v28 }
 0xc0d   :  { %v527_v31 = vadd.f32 1.0, %v1299_v30  ;;  %v1113_v30 = vld [vmem:[%s1904_s10 + $0x8] sm:$0xff] }
 0xc0e   :  { %1138 = vmatpush.msrb.mxu0 %v1114_v29  ;;  %v597_v29 = vld [vmem:[%s1895_s1 + $0x18] sm:$0xff] }
 0xc0f   :  { %1300 = vrcp.f32 %v527_v31  ;;  %v539_v37 = vand.u32 2147483648, %v527_v31  ;;  %vm533_vm9 = vweird.f32 %v527_v31  ;;  %v537_v11 = vand.u32 2147483647, %v527_v31 }
 0xc10   :  { %1139 = vmatpush.msrb.mxu0 %v1113_v30 }
 0xc11   :  { %v540_v38 = vor.u32 1.1754944e-38, %v539_v37  ;;  %vm538_vm11 = vcmp.eq.f32.partialorder %v537_v11, 8.507059e+37  ;;  %v1815_v37 = vld [vmem:[#allocation10] ss:$0 sm:$0xff] }
 0xc15   :  { %v1301_v32 = vpop.eup %1300 }
 0xc16   :  { %v529_v33 = vmul.f32 %v1301_v32, %v527_v31  ;;  %vm534_vm8 = vweird.f32 %v1301_v32  ;;  %v1112_v31 = vld [vmem:[%s1904_s10] sm:$0xff] }
 0xc17   :  { %vm535_vm10 = vmor %vm533_vm9, %vm534_vm8  ;;  %1140 = vmatpush.msrb.mxu0 %v1112_v31 }
 0xc18   :  { %v530_v34 = vsub.f32 1.0, %v529_v33 }
 0xc1a   :  { %v531_v35 = vmul.f32 %v1301_v32, %v530_v34 }
 0xc1c   :  { %v532_v36 = vadd.f32 %v1301_v32, %v531_v35 }
 0xc1e   :  { %v536_v6 = vsel %vm535_vm10, %v1301_v32, %v532_v36 }
 0xc1f   :  { %v541_v40 = vsel %vm538_vm11, %v540_v38, %v536_v6 }
 0xc20   :  { %v544_v42 = vmul.f32 %v541_v40, %v491_v21 }
 0xc65   :  { %v547_v39 = vpop.permute.xlu2 %546 }
 0xc66   :  { %v549_v41 = vmul.f32 %v547_v39, %v541_v40 }
 0xc68   :  { %551 = vrot.lane.b32.xlu0 %v549_v41, %s1521_s4 }
 0xc88   :  { %v648_v35 = vpop.f32.mrf.mxu2 }
 0xc89   :  { %v649_v36 = vadd.f32 %v1785_v63, %v648_v35 }
 0xcda   :  { %v552_v43 = vpop.permute.xlu0 %551 }
 0xcdb   :  { %v554_v44 = vadd.f32 %v552_v43, %v544_v42 }
 0xcdd   :  { %1302 = vtanh.f32 %v554_v44 }
 0xce3   :  { %v1303_v45 = vpop.eup %1302 }
 0xce4   :  { %557 = vrot.lane.b32.xlu1 %v1303_v45, %s1520_s19 }
 0xd56   :  { %v558_v50 = vpop.permute.xlu1 %557 }
 0xd57   :  { %v560_v51 = vmul.f32 %v558_v50, %v541_v40 }
 0xd59   :  { %570 = vrot.lane.b32.xlu2 %v560_v51, %s1521_s4 }
 0xdb3   :  { %v571_v57 = vpop.permute.xlu2 %570 }
 0xdb4   :  { %1208 = vmatmul.msk.f32.vlgmr.msra.gmra.mxu1 %vm184_vm5, %v571_v57 }
 0xdb5   :  { %877 = vmatpush.msra.mxu1 %v1741_v53 }
 0xdb7   :  { %878 = vmatpush.msra.mxu1 %v1747_v55 }
 0xdb9   :  { %879 = vmatpush.msra.mxu1 %v1752_v56 }
 0xdbb   :  { %880 = vmatpush.msra.mxu1 %v1767_v59 }
 0xe31   :  { %v591_v61 = vpop.f32.mrf.mxu1 }
 0xe32   :  { %v592_v62 = vadd.f32 %v1253_v60, %v591_v61 }
 0xe34   :  { %714 = vrot.lane.b32.xlu1 %v592_v62, %s1521_s4  ;;  %1216 = vmatmul.msk.f32.vlgmr.msrb.gmra.mxu3 %vm184_vm5, %v592_v62 }
 0xe35   :  { %940 = vmatpush.msrb.mxu3 %v1741_v53 }
 0xe37   :  { %941 = vmatpush.msrb.mxu3 %v1747_v55 }
 0xe39   :  { %942 = vmatpush.msrb.mxu3 %v1752_v56 }
 0xe3b   :  { %943 = vmatpush.msrb.mxu3 %v1767_v59 }
 0xea6   :  { %v715_v9 = vpop.permute.xlu1 %714 }
 0xeb7   :  { %v690_v2 = vpop.f32.mrf.mxu3 }
 0xeb8   :  { %v693_v3 = vadd.f32 %v690_v2, %v646_v1  ;;  %v596_v1 = vld [vmem:[%s1895_s1 + $0x10] sm:$0xff] }
 0xeb9   :  { %1211 = vmatmul.msk.f32.gmra.mxu2 %vm126_vm0, %v596_v1 }
 0xeba   :  { %1304 = vtanh.f32 %v693_v3  ;;  %v1217_v5 = vmul.f32 -1.442695, %v693_v3 }
 0xebc   :  { %1306 = vpow2.f32 %v1217_v5 }
 0xec0   :  { %v1305_v4 = vpop.eup %1304 }
 0xec1   :  { %719 = vrot.lane.b32.xlu0 %v1305_v4, %s1520_s19  ;;  %1212 = vmatmul.msk.f32.gmra.mxu2 %vm126_vm0, %v597_v29 }
 0xec2   :  { %v1307_v7 = vpop.eup %1306 }
 0xec3   :  { %v697_v10 = vadd.f32 1.0, %v1307_v7 }
 0xec5   :  { %1308 = vrcp.f32 %v697_v10  ;;  %v709_v16 = vand.u32 2147483648, %v697_v10  ;;  %vm703_vm13 = vweird.f32 %v697_v10  ;;  %v707_v17 = vand.u32 2147483647, %v697_v10 }
 0xec7   :  { %v710_v19 = vor.u32 1.1754944e-38, %v709_v16  ;;  %vm708_vm15 = vcmp.eq.f32.partialorder %v707_v17, 8.507059e+37 }
 0xecb   :  { %v1309_v12 = vpop.eup %1308 }
 0xecc   :  { %v699_v13 = vmul.f32 %v1309_v12, %v697_v10  ;;  %vm704_vm12 = vweird.f32 %v1309_v12 }
 0xecd   :  { %vm705_vm14 = vmor %vm703_vm13, %vm704_vm12 }
 0xece   :  { %v700_v8 = vsub.f32 1.0, %v699_v13 }
 0xed0   :  { %v701_v14 = vmul.f32 %v1309_v12, %v700_v8 }
 0xed2   :  { %v702_v15 = vadd.f32 %v1309_v12, %v701_v14 }
 0xed4   :  { %v706_v18 = vsel %vm705_vm14, %v1309_v12, %v702_v15 }
 0xed5   :  { %v711_v21 = vsel %vm708_vm15, %v710_v19, %v706_v18 }
 0xed6   :  { %v717_v23 = vmul.f32 %v715_v9, %v711_v21 }
 0xf33   :  { %v720_v20 = vpop.permute.xlu0 %719 }
 0xf34   :  { %v722_v22 = vmul.f32 %v720_v20, %v711_v21 }
 0xf36   :  { %724 = vrot.lane.b32.xlu2 %v722_v22, %s1521_s4 }
 0xf3c   :  { %v651_v7 = vpop.f32.mrf.mxu2 }
 0xf3d   :  { %v652_v12 = vadd.f32 %v1785_v63, %v651_v7 }
 0xf90   :  { %v725_v24 = vpop.permute.xlu2 %724 }
 0xf91   :  { %v727_v25 = vadd.f32 %v725_v24, %v717_v23 }
 0xf93   :  { %1310 = vtanh.f32 %v727_v25 }
 0xf99   :  { %v1311_v26 = vpop.eup %1310 }
 0xf9a   :  { %730 = vrot.lane.b32.xlu0 %v1311_v26, %s1520_s19 }
0x100c   :  { %v731_v32 = vpop.permute.xlu0 %730 }
0x100d   :  { %v733_v33 = vmul.f32 %v731_v32, %v711_v21 }
0x100f   :  { %735 = vrot.lane.b32.xlu1 %v733_v33, %s1521_s4  ;;  %v654_v33 = vpop.f32.mrf.mxu2 }
0x1081   :  { %v736_v34 = vpop.permute.xlu1 %735 }
0x1082   :  { %1218 = vmatmul.msk.f32.vlgmr.msrb.gmra.mxu1 %vm184_vm5, %v736_v34  ;;  %1230 = vmatmul.msk.f32.vlgmr.msrb.gmra.mxu0 %vm184_vm5, %v736_v34  ;;  %v655_v34 = vadd.f32 %v1785_v63, %v654_v33 }
0x1083   :  { %1003 = vmatpush.msrb.mxu1 %v1741_v53 }
0x1085   :  { %1004 = vmatpush.msrb.mxu1 %v1747_v55 }
0x1087   :  { %1005 = vmatpush.msrb.mxu1 %v1752_v56 }
0x1089   :  { %1006 = vmatpush.msrb.mxu1 %v1767_v59 }
0x10ff   :  { %v756_v11 = vpop.f32.mrf.mxu1  ;;  %v1142_v6 = vpop.f32.mrf.mxu0 }
0x1100   :  { %v759_v38 = vadd.f32 %v756_v11, %v649_v36  ;;  %v1143_v39 = vadd.f32 %v1815_v37, %v1142_v6 }
0x1102   :  { %1312 = vtanh.f32 %v759_v38  ;;  %1163 = vst [vmem:[#allocation11] sm:$0xff] %v1143_v39  ;;  %v1219_v41 = vmul.f32 -1.442695, %v759_v38 }
0x1104   :  { %1314 = vpow2.f32 %v1219_v41 }
0x1108   :  { %v1313_v40 = vpop.eup %1312 }
0x1109   :  { %782 = vrot.lane.b32.xlu2 %v1313_v40, %s1520_s19 }
0x110a   :  { %v1315_v42 = vpop.eup %1314 }
0x110b   :  { %v763_v43 = vadd.f32 1.0, %v1315_v42 }
0x110d   :  { %1316 = vrcp.f32 %v763_v43  ;;  %v775_v49 = vand.u32 2147483648, %v763_v43  ;;  %vm769_vm2 = vweird.f32 %v763_v43  ;;  %v773_v50 = vand.u32 2147483647, %v763_v43 }
0x110f   :  { %v776_v52 = vor.u32 1.1754944e-38, %v775_v49  ;;  %vm774_vm4 = vcmp.eq.f32.partialorder %v773_v50, 8.507059e+37 }
0x1113   :  { %v1317_v44 = vpop.eup %1316 }
0x1114   :  { %v765_v45 = vmul.f32 %v1317_v44, %v763_v43  ;;  %vm770_vm1 = vweird.f32 %v1317_v44 }
0x1115   :  { %vm771_vm3 = vmor %vm769_vm2, %vm770_vm1 }
0x1116   :  { %v766_v46 = vsub.f32 1.0, %v765_v45 }
0x1118   :  { %v767_v47 = vmul.f32 %v1317_v44, %v766_v46 }
0x111a   :  { %v768_v48 = vadd.f32 %v1317_v44, %v767_v47 }
0x111c   :  { %v772_v51 = vsel %vm771_vm3, %v1317_v44, %v768_v48 }
0x111d   :  { %v777_v57 = vsel %vm774_vm4, %v776_v52, %v772_v51 }
0x111e   :  { %v780_v60 = vmul.f32 %v777_v57, %v727_v25 }
0x1163   :  { %v783_v54 = vpop.permute.xlu2 %782 }
0x1164   :  { %v785_v58 = vmul.f32 %v783_v54, %v777_v57 }
0x1166   :  { %787 = vrot.lane.b32.xlu0 %v785_v58, %s1521_s4 }
0x11d8   :  { %v788_v61 = vpop.permute.xlu0 %787 }
0x11d9   :  { %v790_v62 = vadd.f32 %v788_v61, %v780_v60 }
0x11db   :  { %1318 = vtanh.f32 %v790_v62 }
0x11e1   :  { %v1319_v0 = vpop.eup %1318 }
0x11e2   :  { %793 = vrot.lane.b32.xlu1 %v1319_v0, %s1520_s19 }
0x1254   :  { %v794_v2 = vpop.permute.xlu1 %793 }
0x1255   :  { %v796_v3 = vmul.f32 %v794_v2, %v777_v57 }
0x1257   :  { %798 = vrot.lane.b32.xlu2 %v796_v3, %s1521_s4 }
0x12b1   :  { %v799_v4 = vpop.permute.xlu2 %798 }
0x12b2   :  { %1220 = vmatmul.msk.f32.vlgmr.msra.gmra.mxu3 %vm184_vm5, %v799_v4  ;;  %1231 = vmatmul.msk.f32.gmra.mxu0 %vm184_vm5, %v799_v4 }
0x12b3   :  { %1066 = vmatpush.msra.mxu3 %v1741_v53 }
0x12b5   :  { %1067 = vmatpush.msra.mxu3 %v1747_v55 }
0x12b7   :  { %1068 = vmatpush.msra.mxu3 %v1752_v56 }
0x12b9   :  { %1069 = vmatpush.msra.mxu3 %v1767_v59 }
0x132f   :  { %v1145_v5 = vpop.f32.mrf.mxu0 }
0x1330   :  { %v1146_v10 = vadd.f32 %v1815_v37, %v1145_v5 }
0x1332   :  { %1164 = vst [vmem:[#allocation11 + $0x8] sm:$0xff] %v1146_v10 }
0x1335   :  { %v819_v13 = vpop.f32.mrf.mxu3 }
0x1336   :  { %v822_v8 = vadd.f32 %v819_v13, %v652_v12 }
0x1338   :  { %1320 = vtanh.f32 %v822_v8  ;;  %v1221_v53 = vmul.f32 -1.442695, %v822_v8 }
0x133a   :  { %1322 = vpow2.f32 %v1221_v53 }
0x133e   :  { %v1321_v14 = vpop.eup %1320 }
0x133f   :  { %845 = vrot.lane.b32.xlu0 %v1321_v14, %s1520_s19 }
0x1340   :  { %v1323_v55 = vpop.eup %1322 }
0x1341   :  { %v826_v15 = vadd.f32 1.0, %v1323_v55 }
0x1343   :  { %1324 = vrcp.f32 %v826_v15  ;;  %v838_v19 = vand.u32 2147483648, %v826_v15  ;;  %vm832_vm7 = vweird.f32 %v826_v15  ;;  %v836_v20 = vand.u32 2147483647, %v826_v15 }
0x1345   :  { %v839_v22 = vor.u32 1.1754944e-38, %v838_v19  ;;  %vm837_vm9 = vcmp.eq.f32.partialorder %v836_v20, 8.507059e+37 }
0x1349   :  { %v1325_v56 = vpop.eup %1324 }
0x134a   :  { %v828_v59 = vmul.f32 %v1325_v56, %v826_v15  ;;  %vm833_vm6 = vweird.f32 %v1325_v56 }
0x134b   :  { %vm834_vm8 = vmor %vm832_vm7, %vm833_vm6 }
0x134c   :  { %v829_v16 = vsub.f32 1.0, %v828_v59 }
0x134e   :  { %v830_v17 = vmul.f32 %v1325_v56, %v829_v16 }
0x1350   :  { %v831_v18 = vadd.f32 %v1325_v56, %v830_v17 }
0x1352   :  { %v835_v21 = vsel %vm834_vm8, %v1325_v56, %v831_v18 }
0x1353   :  { %v840_v23 = vsel %vm837_vm9, %v839_v22, %v835_v21 }
0x1354   :  { %v843_v25 = vmul.f32 %v840_v23, %v790_v62  ;;  %v598_v62 = vld [vmem:[%s1895_s1 + $0x20] sm:$0xff] }
0x1355   :  { %1213 = vmatmul.msk.f32.gmra.mxu2 %vm126_vm0, %v598_v62 }
0x13b1   :  { %v846_v9 = vpop.permute.xlu0 %845 }
0x13b2   :  { %v848_v24 = vmul.f32 %v846_v9, %v840_v23 }
0x13b4   :  { %850 = vrot.lane.b32.xlu1 %v848_v24, %s1521_s4 }
0x13d8   :  { %v657_v4 = vpop.f32.mrf.mxu2 }
0x13d9   :  { %v658_v7 = vadd.f32 %v1785_v63, %v657_v4 }
0x1426   :  { %v851_v26 = vpop.permute.xlu1 %850 }
0x1427   :  { %v853_v27 = vadd.f32 %v851_v26, %v843_v25 }
0x1429   :  { %1326 = vtanh.f32 %v853_v27 }
0x142f   :  { %v1327_v28 = vpop.eup %1326 }
0x1430   :  { %856 = vrot.lane.b32.xlu2 %v1327_v28, %s1520_s19 }
0x148a   :  { %v857_v30 = vpop.permute.xlu2 %856 }
0x148b   :  { %v859_v31 = vmul.f32 %v857_v30, %v840_v23 }
0x148d   :  { %861 = vrot.lane.b32.xlu0 %v859_v31, %s1521_s4 }
0x14ff   :  { %v862_v32 = vpop.permute.xlu0 %861 }
0x1500   :  { %1222 = vmatmul.msk.f32.vlgmr.msra.gmra.mxu1 %vm184_vm5, %v862_v32  ;;  %1232 = vmatmul.msk.f32.gmra.mxu0 %vm184_vm5, %v862_v32 }
0x157d   :  { %v882_v35 = vpop.f32.mrf.mxu1  ;;  %v1148_v36 = vpop.f32.mrf.mxu0 }
0x157e   :  { %v885_v11 = vadd.f32 %v882_v35, %v655_v34  ;;  %v1149_v6 = vadd.f32 %v1815_v37, %v1148_v36 }
0x1580   :  { %1328 = vtanh.f32 %v885_v11  ;;  %1165 = vst [vmem:[#allocation11 + $0x10] sm:$0xff] %v1149_v6  ;;  %v1223_v39 = vmul.f32 -1.442695, %v885_v11 }
0x1582   :  { %1330 = vpow2.f32 %v1223_v39 }
0x1586   :  { %v1329_v38 = vpop.eup %1328 }
0x1587   :  { %908 = vrot.lane.b32.xlu1 %v1329_v38, %s1520_s19 }
0x1588   :  { %v1331_v40 = vpop.eup %1330 }
0x1589   :  { %v889_v41 = vadd.f32 1.0, %v1331_v40 }
0x158b   :  { %1332 = vrcp.f32 %v889_v41  ;;  %v901_v47 = vand.u32 2147483648, %v889_v41  ;;  %vm895_vm11 = vweird.f32 %v889_v41  ;;  %v899_v48 = vand.u32 2147483647, %v889_v41 }
0x158d   :  { %v902_v50 = vor.u32 1.1754944e-38, %v901_v47  ;;  %vm900_vm13 = vcmp.eq.f32.partialorder %v899_v48, 8.507059e+37 }
0x1591   :  { %v1333_v42 = vpop.eup %1332 }
0x1592   :  { %v891_v43 = vmul.f32 %v1333_v42, %v889_v41  ;;  %vm896_vm10 = vweird.f32 %v1333_v42 }
0x1593   :  { %vm897_vm12 = vmor %vm895_vm11, %vm896_vm10 }
0x1594   :  { %v892_v44 = vsub.f32 1.0, %v891_v43 }
0x1596   :  { %v893_v45 = vmul.f32 %v1333_v42, %v892_v44 }
0x1598   :  { %v894_v46 = vadd.f32 %v1333_v42, %v893_v45 }
0x159a   :  { %v898_v49 = vsel %vm897_vm12, %v1333_v42, %v894_v46 }
0x159b   :  { %v903_v52 = vsel %vm900_vm13, %v902_v50, %v898_v49 }
0x159c   :  { %v906_v57 = vmul.f32 %v903_v52, %v853_v27  ;;  %v599_v27 = vld [vmem:[%s1895_s1 + $0x28] sm:$0xff] }
0x159d   :  { %1214 = vmatmul.msk.f32.gmra.mxu2 %vm126_vm0, %v599_v27 }
0x15f9   :  { %v909_v51 = vpop.permute.xlu1 %908 }
0x15fa   :  { %v911_v54 = vmul.f32 %v909_v51, %v903_v52 }
0x15fc   :  { %913 = vrot.lane.b32.xlu2 %v911_v54, %s1521_s4 }
0x1620   :  { %v660_v31 = vpop.f32.mrf.mxu2 }
0x1621   :  { %v661_v32 = vadd.f32 %v1785_v63, %v660_v31 }
0x1656   :  { %v914_v58 = vpop.permute.xlu2 %913 }
0x1657   :  { %v916_v60 = vadd.f32 %v914_v58, %v906_v57 }
0x1659   :  { %1334 = vtanh.f32 %v916_v60 }
0x165f   :  { %v1335_v61 = vpop.eup %1334 }
0x1660   :  { %919 = vrot.lane.b32.xlu0 %v1335_v61, %s1520_s19 }
0x16d2   :  { %v920_v0 = vpop.permute.xlu0 %919 }
0x16d3   :  { %v922_v1 = vmul.f32 %v920_v0, %v903_v52 }
0x16d5   :  { %924 = vrot.lane.b32.xlu1 %v922_v1, %s1521_s4 }
0x1747   :  { %v925_v2 = vpop.permute.xlu1 %924 }
0x1748   :  { %1224 = vmatmul.msk.f32.vlgmr.msrb.gmra.mxu3 %vm184_vm5, %v925_v2  ;;  %1233 = vmatmul.msk.f32.gmra.mxu0 %vm184_vm5, %v925_v2 }
0x17c5   :  { %v1151_v3 = vpop.f32.mrf.mxu0 }
0x17c6   :  { %v1152_v5 = vadd.f32 %v1815_v37, %v1151_v3 }
0x17c8   :  { %1166 = vst [vmem:[#allocation11 + $0x18] sm:$0xff] %v1152_v5 }
0x17cb   :  { %v945_v10 = vpop.f32.mrf.mxu3 }
0x17cc   :  { %v948_v12 = vadd.f32 %v945_v10, %v658_v7 }
0x17ce   :  { %1336 = vtanh.f32 %v948_v12  ;;  %v1225_v8 = vmul.f32 -1.442695, %v948_v12 }
0x17d0   :  { %1338 = vpow2.f32 %v1225_v8 }
0x17d4   :  { %v1337_v13 = vpop.eup %1336 }
0x17d5   :  { %971 = vrot.lane.b32.xlu2 %v1337_v13, %s1520_s19 }
0x17d6   :  { %v1339_v14 = vpop.eup %1338 }
0x17d7   :  { %v952_v53 = vadd.f32 1.0, %v1339_v14 }
0x17d9   :  { %1340 = vrcp.f32 %v952_v53  ;;  %v964_v17 = vand.u32 2147483648, %v952_v53  ;;  %vm958_vm15 = vweird.f32 %v952_v53  ;;  %v962_v18 = vand.u32 2147483647, %v952_v53 }
0x17db   :  { %v965_v20 = vor.u32 1.1754944e-38, %v964_v17  ;;  %vm963_vm2 = vcmp.eq.f32.partialorder %v962_v18, 8.507059e+37 }
0x17df   :  { %v1341_v55 = vpop.eup %1340 }
0x17e0   :  { %v954_v15 = vmul.f32 %v1341_v55, %v952_v53  ;;  %vm959_vm14 = vweird.f32 %v1341_v55 }
0x17e1   :  { %vm960_vm1 = vmor %vm958_vm15, %vm959_vm14 }
0x17e2   :  { %v955_v56 = vsub.f32 1.0, %v954_v15 }
0x17e4   :  { %v956_v59 = vmul.f32 %v1341_v55, %v955_v56 }
0x17e6   :  { %v957_v16 = vadd.f32 %v1341_v55, %v956_v59 }
0x17e8   :  { %v961_v19 = vsel %vm960_vm1, %v1341_v55, %v957_v16 }
0x17e9   :  { %v966_v22 = vsel %vm963_vm2, %v965_v20, %v961_v19 }
0x17ea   :  { %v969_v23 = vmul.f32 %v966_v22, %v916_v60  ;;  %v600_v60 = vld [vmem:[%s1895_s1 + $0x30] sm:$0xff]  ;;  %s1522_s1 = smov [#allocation11]  }
0x17eb   :  { %1215 = vmatmul.msk.f32.gmra.mxu2 %vm126_vm0, %v600_v60  ;;  %s1174_s3 = sshll.u32 %s1522_s1, 4  ;;  %s1175_s3 = int_to_ptr.vmem [resolvable:$true] %s1174_s3 }
0x182f   :  { %v972_v21 = vpop.permute.xlu2 %971 }
0x1830   :  { %v974_v9 = vmul.f32 %v972_v21, %v966_v22 }
0x1832   :  { %976 = vrot.lane.b32.xlu0 %v974_v9, %s1521_s4 }
0x186e   :  { %v663_v2 = vpop.f32.mrf.mxu2 }
0x186f   :  { %v664_v4 = vadd.f32 %v1785_v63, %v663_v2 }
0x18a4   :  { %v977_v24 = vpop.permute.xlu0 %976 }
0x18a5   :  { %v979_v25 = vadd.f32 %v977_v24, %v969_v23 }
0x18a7   :  { %1342 = vtanh.f32 %v979_v25 }
0x18ad   :  { %v1343_v26 = vpop.eup %1342 }
0x18ae   :  { %982 = vrot.lane.b32.xlu1 %v1343_v26, %s1520_s19 }
0x1920   :  { %v983_v28 = vpop.permute.xlu1 %982 }
0x1921   :  { %v985_v29 = vmul.f32 %v983_v28, %v966_v22 }
0x1923   :  { %987 = vrot.lane.b32.xlu2 %v985_v29, %s1521_s4 }
0x197d   :  { %v988_v30 = vpop.permute.xlu2 %987 }
0x197e   :  { %1226 = vmatmul.msk.f32.vlgmr.msrb.gmra.mxu1 %vm184_vm5, %v988_v30  ;;  %1234 = vmatmul.msk.f32.gmra.mxu0 %vm184_vm5, %v988_v30 }
0x19fb   :  { %v1008_v33 = vpop.f32.mrf.mxu1  ;;  %v1154_v34 = vpop.f32.mrf.mxu0 }
0x19fc   :  { %v1011_v35 = vadd.f32 %v1008_v33, %v661_v32  ;;  %v1155_v36 = vadd.f32 %v1815_v37, %v1154_v34 }
0x19fe   :  { %1344 = vtanh.f32 %v1011_v35  ;;  %1167 = vst [vmem:[#allocation11 + $0x20] sm:$0xff] %v1155_v36  ;;  %v1227_v6 = vmul.f32 -1.442695, %v1011_v35 }
0x1a00   :  { %1346 = vpow2.f32 %v1227_v6 }
0x1a04   :  { %v1345_v11 = vpop.eup %1344 }
0x1a05   :  { %1034 = vrot.lane.b32.xlu0 %v1345_v11, %s1520_s19 }
0x1a06   :  { %v1347_v38 = vpop.eup %1346 }
0x1a07   :  { %v1015_v39 = vadd.f32 1.0, %v1347_v38 }
0x1a09   :  { %1348 = vrcp.f32 %v1015_v39  ;;  %v1027_v45 = vand.u32 2147483648, %v1015_v39  ;;  %vm1021_vm4 = vweird.f32 %v1015_v39  ;;  %v1025_v46 = vand.u32 2147483647, %v1015_v39 }
0x1a0b   :  { %v1028_v48 = vor.u32 1.1754944e-38, %v1027_v45  ;;  %vm1026_vm7 = vcmp.eq.f32.partialorder %v1025_v46, 8.507059e+37 }
0x1a0f   :  { %v1349_v40 = vpop.eup %1348 }
0x1a10   :  { %v1017_v41 = vmul.f32 %v1349_v40, %v1015_v39  ;;  %vm1022_vm3 = vweird.f32 %v1349_v40 }
0x1a11   :  { %vm1023_vm6 = vmor %vm1021_vm4, %vm1022_vm3 }
0x1a12   :  { %v1018_v42 = vsub.f32 1.0, %v1017_v41 }
0x1a14   :  { %v1019_v43 = vmul.f32 %v1349_v40, %v1018_v42 }
0x1a16   :  { %v1020_v44 = vadd.f32 %v1349_v40, %v1019_v43 }
0x1a18   :  { %v1024_v47 = vsel %vm1023_vm6, %v1349_v40, %v1020_v44 }
0x1a19   :  { %v1029_v50 = vsel %vm1026_vm7, %v1028_v48, %v1024_v47 }
0x1a1a   :  { %v1032_v52 = vmul.f32 %v1029_v50, %v979_v25 }
0x1a77   :  { %v1035_v49 = vpop.permute.xlu0 %1034 }
0x1a78   :  { %v1037_v51 = vmul.f32 %v1035_v49, %v1029_v50 }
0x1a7a   :  { %1039 = vrot.lane.b32.xlu1 %v1037_v51, %s1521_s4 }
0x1aec   :  { %v1040_v54 = vpop.permute.xlu1 %1039 }
0x1aed   :  { %v1042_v57 = vadd.f32 %v1040_v54, %v1032_v52 }
0x1aef   :  { %1350 = vtanh.f32 %v1042_v57 }
0x1af5   :  { %v1351_v58 = vpop.eup %1350 }
0x1af6   :  { %1045 = vrot.lane.b32.xlu2 %v1351_v58, %s1520_s19 }
0x1b50   :  { %v1046_v61 = vpop.permute.xlu2 %1045 }
0x1b51   :  { %v1048_v62 = vmul.f32 %v1046_v61, %v1029_v50 }
0x1b53   :  { %1050 = vrot.lane.b32.xlu0 %v1048_v62, %s1521_s4 }
0x1bc5   :  { %v1051_v0 = vpop.permute.xlu0 %1050 }
0x1bc6   :  { %1228 = vmatmul.msk.f32.vlgmr.msra.gmra.mxu3 %vm184_vm5, %v1051_v0  ;;  %1235 = vmatmul.msk.f32.gmra.mxu0 %vm184_vm5, %v1051_v0 }
0x1c43   :  { %v1157_v1 = vpop.f32.mrf.mxu0 }
0x1c44   :  { %v1158_v3 = vadd.f32 %v1815_v37, %v1157_v1 }
0x1c46   :  { %1168 = vst [vmem:[#allocation11 + $0x28] sm:$0xff] %v1158_v3 }
0x1c49   :  { %v1071_v5 = vpop.f32.mrf.mxu3 }
0x1c4a   :  { %v1074_v7 = vadd.f32 %v1071_v5, %v664_v4 }
0x1c4c   :  { %1352 = vtanh.f32 %v1074_v7  ;;  %v1229_v12 = vmul.f32 -1.442695, %v1074_v7 }
0x1c4e   :  { %1354 = vpow2.f32 %v1229_v12 }
0x1c52   :  { %v1353_v10 = vpop.eup %1352 }
0x1c53   :  { %1097 = vrot.lane.b32.xlu1 %v1353_v10, %s1520_s19 }
0x1c54   :  { %v1355_v13 = vpop.eup %1354 }
0x1c55   :  { %v1078_v8 = vadd.f32 1.0, %v1355_v13 }
0x1c57   :  { %1356 = vrcp.f32 %v1078_v8  ;;  %v1090_v59 = vand.u32 2147483648, %v1078_v8  ;;  %vm1084_vm8 = vweird.f32 %v1078_v8  ;;  %v1088_v63 = vand.u32 2147483647, %v1078_v8 }
0x1c59   :  { %v1091_v17 = vor.u32 1.1754944e-38, %v1090_v59  ;;  %vm1089_vm10 = vcmp.eq.f32.partialorder %v1088_v63, 8.507059e+37 }
0x1c5d   :  { %v1357_v14 = vpop.eup %1356 }
0x1c5e   :  { %v1080_v53 = vmul.f32 %v1357_v14, %v1078_v8  ;;  %vm1085_vm0 = vweird.f32 %v1357_v14 }
0x1c5f   :  { %vm1086_vm9 = vmor %vm1084_vm8, %vm1085_vm0 }
0x1c60   :  { %v1081_v55 = vsub.f32 1.0, %v1080_v53 }
0x1c62   :  { %v1082_v15 = vmul.f32 %v1357_v14, %v1081_v55 }
0x1c64   :  { %v1083_v56 = vadd.f32 %v1357_v14, %v1082_v15 }
0x1c66   :  { %v1087_v16 = vsel %vm1086_vm9, %v1357_v14, %v1083_v56 }
0x1c67   :  { %v1092_v19 = vsel %vm1089_vm10, %v1091_v17, %v1087_v16 }
0x1c68   :  { %v1095_v21 = vmul.f32 %v1092_v19, %v1042_v57 }
0x1cc5   :  { %v1098_v18 = vpop.permute.xlu1 %1097 }
0x1cc6   :  { %v1100_v20 = vmul.f32 %v1098_v18, %v1092_v19 }
0x1cc8   :  { %1102 = vrot.lane.b32.xlu2 %v1100_v20, %s1521_s4 }
0x1d22   :  { %v1103_v22 = vpop.permute.xlu2 %1102 }
0x1d23   :  { %v1105_v9 = vadd.f32 %v1103_v22, %v1095_v21 }
0x1d25   :  { %1358 = vtanh.f32 %v1105_v9 }
0x1d2b   :  { %v1359_v23 = vpop.eup %1358 }
0x1d2c   :  { %1108 = vrot.lane.b32.xlu0 %v1359_v23, %s1520_s19 }
0x1d9e   :  { %v1109_v24 = vpop.permute.xlu0 %1108 }
0x1d9f   :  { %v1111_v25 = vmul.f32 %v1109_v24, %v1092_v19 }
0x1da1   :  { %1121 = vrot.lane.b32.xlu1 %v1111_v25, %s1521_s4 }
0x1e13   :  { %v1122_v26 = vpop.permute.xlu1 %1121 }
0x1e14   :  { %1236 = vmatmul.msk.f32.gmra.mxu0 %vm184_vm5, %v1122_v26 }
0x1e91   :  { %v1160_v27 = vpop.f32.mrf.mxu0 }
0x1e92   :  { %v1161_v28 = vadd.f32 %v1815_v37, %v1160_v27 }
0x1e94   :  { %1169 = vst [vmem:[#allocation11 + $0x30] sm:$0xff] %v1161_v28 }
0x1e95   :  { %1182 = dma.vmem_to_hbm [thread:$0]  %s1175_s3, 896, %s1177_s22, [#allocation4], %s1515_s20, %s1515_s20, %s1516_s9  }
0x1e96   :  { %1510 = dma.done.wait [#allocation4], 896  }
0x1e97   :  { %1511 = vsyncadd [#allocation4], 4294966400 }
0x1e98   :  { %1187 = vsyncpa [#allocation3], 1 }
0x1e99   :  { %1188 = vsyncpa [#allocation6], 1 }
0x1e9a   :  { %1189 = vsyncpa [#allocation9], 1 }
0x1e9b   :  { %1190 = vsyncpa [#allocation4], 1 }

</bundles_post_ra>
